<compile_context>
chip_gen: v7x
topology: tpu7x:2x2x1
jax: 0.10.0
libtpu: 0.0.40
codegen_flags: <defaults>
</compile_context>

<pallas_src>
import numpy as np
import jax
import jax.numpy as jnp
from jax.experimental import pallas as pl
from jax.experimental.pallas import tpu as pltpu

BN_EPS = 1e-5
CDT = jnp.bfloat16            # MXU operand dtype (accumulation is f32)

# ------------------------------ model config (small) ------------------------------
NUM_CH_IN = 4
IN_PLANES = 8
LAYER_PLANES = [8, 16, 32, 64]
LAYER_STRIDES = [1, 2, 2, 2]          # layers=[1,1,1,1], block=BasicBlock
NUM_OUT = LAYER_PLANES[-1]


def _round_up(x, m):
    return ((x + m - 1) // m) * m


# --------------------------------------------------------------------------
# Host-side plan construction (dense conv matrices with BN folded in)
# --------------------------------------------------------------------------
def _kaiming_conv(key, cout, cin, kh, kw):
    fan_out = cout * kh * kw
    std = (2.0 / fan_out) ** 0.5
    w = jax.random.normal(key, (cout, cin, kh, kw), dtype=jnp.float32) * std
    return np.asarray(w)


def _bn_scale(c):
    # eval-mode BN, fresh-module stats: y = x / sqrt(1 + eps); shift == 0 -> dropped.
    return np.full((c,), 1.0 / np.sqrt(1.0 + BN_EPS), np.float32)


def _dense_conv_matrix(w_oihw, bn_scale, hin, win, stride, pad):
    """Full dense conv matrix:  out_flat = in_flat @ M,  flat layout (h*W + w)*C + c."""
    cout, cin, kh, kw = w_oihw.shape
    hout = (hin + 2 * pad - kh) // stride + 1
    wout = (win + 2 * pad - kw) // stride + 1
    m = np.zeros((hin * win * cin, hout * wout * cout), np.float32)
    wt = w_oihw.transpose(2, 3, 1, 0) * bn_scale[None, None, None, :]  # (kh,kw,cin,cout)
    for oi in range(hout):
        for oj in range(wout):
            col = (oi * wout + oj) * cout
            for di in range(kh):
                ii = oi * stride + di - pad
                if not (0 <= ii < hin):
                    continue
                for dj in range(kw):
                    ij = oj * stride + dj - pad
                    if not (0 <= ij < win):
                        continue
                    row = (ii * win + ij) * cin
                    m[row:row + cin, col:col + cout] += wt[di, dj]
    return m, hout, wout


def _pool_gather_stacked(hin, win, c, tap_pad):
    """3x3 / stride 2 / pad 1 max pool: per-tap 0/1 gather matrices, lane-stacked.
    Each tap occupies a `tap_pad`-wide (128-aligned) column block.  Input is
    post-ReLU (>= 0), so 0-padding is equivalent to -inf padding."""
    k, s, p = 3, 2, 1
    hout = (hin + 2 * p - k) // s + 1
    wout = (win + 2 * p - k) // s + 1
    mats = []
    for di in range(k):
        for dj in range(k):
            g = np.zeros((hin * win * c, tap_pad), np.float32)
            any_tap = False
            for oi in range(hout):
                for oj in range(wout):
                    ii = oi * s + di - p
                    ij = oj * s + dj - p
                    if 0 <= ii < hin and 0 <= ij < win:
                        r = (ii * win + ij) * c
                        col = (oi * wout + oj) * c
                        g[r + np.arange(c), col + np.arange(c)] = 1.0
                        any_tap = True
            if any_tap:
                mats.append(g)
    return np.concatenate(mats, axis=1), len(mats), hout, wout


def init_model(key, in_hw=(16, 16)):
    """Builds BN-folded dense conv matrices.  The plan is specialized to the
    build-time input spatial size."""
    keys = iter(jax.random.split(key, 16))
    h0, w0 = in_hw

    # stem: 7x7 / stride 2 / pad 3 conv (+ folded BN) as one dense matmul
    w_stem = _kaiming_conv(next(keys), IN_PLANES, NUM_CH_IN, 7, 7)
    stem_mat, h, w = _dense_conv_matrix(w_stem, _bn_scale(IN_PLANES), h0, w0, 2, 3)

    # max pool output spatial
    ph = (h + 2 - 3) // 2 + 1
    pw = (w + 2 - 3) // 2 + 1

    # residual stage conv matrices (real, unpadded)
    mats, blocks = [], []
    inplanes, ch, cw = IN_PLANES, ph, pw
    for planes, stride in zip(LAYER_PLANES, LAYER_STRIDES):
        wt1 = _kaiming_conv(next(keys), planes, inplanes, 3, 3)
        m1, h1, w1 = _dense_conv_matrix(wt1, _bn_scale(planes), ch, cw, stride, 1)
        wt2 = _kaiming_conv(next(keys), planes, planes, 3, 3)
        m2, h2, w2 = _dense_conv_matrix(wt2, _bn_scale(planes), h1, w1, 1, 1)
        i1 = len(mats); mats.append(m1)
        i2 = len(mats); mats.append(m2)
        idn = None
        if stride != 1 or inplanes != planes:
            wtd = _kaiming_conv(next(keys), planes, inplanes, 1, 1)
            md, _, _ = _dense_conv_matrix(wtd, _bn_scale(planes), ch, cw, stride, 0)
            idn = len(mats); mats.append(md)
        blocks.append({"conv1": i1, "conv2": i2, "down": idn})
        inplanes, ch, cw = planes, h2, w2

    # uniform lane padding for all residual-stage activations (>=128, 128-aligned)
    pad = 128
    for m in mats:
        pad = max(pad, _round_up(m.shape[0], 128), _round_up(m.shape[1], 128))

    pool_mat, n_taps, _, _ = _pool_gather_stacked(h, w, IN_PLANES, pad)

    # one bank: every residual-stage conv matrix zero-padded to (pad, pad)
    bank = np.zeros((len(mats), pad, pad), np.float32)
    for i, m in enumerate(mats):
        bank[i, :m.shape[0], :m.shape[1]] = m

    consts = dict(stem=jnp.asarray(stem_mat, CDT),
                  pool=jnp.asarray(pool_mat, CDT),
                  bank=jnp.asarray(bank, CDT))
    plan = dict(in_hw=tuple(in_hw), pad=pad, n_taps=n_taps, blocks=blocks,
                hw_final=ch * cw, c_final=LAYER_PLANES[-1],
                f_in=h0 * w0 * NUM_CH_IN)
    return plan, consts


# --------------------------------------------------------------------------
# Fused Pallas kernel (whole network, BB samples per grid step)
# --------------------------------------------------------------------------
def _make_kernel(plan):
    pad = plan["pad"]
    n_taps = plan["n_taps"]
    blocks = plan["blocks"]
    hw_final = plan["hw_final"]
    c_final = plan["c_final"]

    def kernel(x_ref, stem_ref, pool_ref, bank_ref, out_ref):
        # stem 7x7 s2 conv (+ folded BN) + ReLU : one dense matmul over the raw input
        h = jnp.dot(x_ref[...], stem_ref[...], preferred_element_type=jnp.float32)
        h = jnp.maximum(h, 0.0)

        # maxpool 3x3 s2 p1: one lane-stacked gather matmul + (n_taps-1) VPU maxes
        g = jnp.dot(h.astype(CDT), pool_ref[...], preferred_element_type=jnp.float32)
        x = g[:, :pad]
        for t in range(1, n_taps):
            x = jnp.maximum(x, g[:, t * pad:(t + 1) * pad])

        # 4 residual stages (one BasicBlock each); activations stay (BB, pad) in vregs
        for blk in blocks:
            xb = x.astype(CDT)
            y = jnp.dot(xb, bank_ref[blk["conv1"]],
                        preferred_element_type=jnp.float32)
            y = jnp.maximum(y, 0.0)
            y = jnp.dot(y.astype(CDT), bank_ref[blk["conv2"]],
                        preferred_element_type=jnp.float32)
            if blk["down"] is not None:
                identity = jnp.dot(xb, bank_ref[blk["down"]],
                                   preferred_element_type=jnp.float32)
            else:
                identity = x
            x = jnp.maximum(y + identity, 0.0)

        # global average pool; lanes [c_final:pad] are already zero via bank padding
        if hw_final == 1:
            out_ref[...] = x                          # lane-dense (BB, pad) f32 store
        else:
            gap = jnp.mean(
                x[:, :hw_final * c_final].reshape(x.shape[0], hw_final, c_final),
                axis=1)
            out_ref[...] = jnp.pad(gap, ((0, 0), (0, pad - c_final)))

    return kernel


# --------------------------------------------------------------------------
# JAX glue
# --------------------------------------------------------------------------
def make_forward(plan, consts):
    kernel = _make_kernel(plan)
    pad, f_in = plan["pad"], plan["f_in"]
    stem, pool, bank = consts["stem"], consts["pool"], consts["bank"]

    def forward(x_nchw):
        assert (x_nchw.shape[2], x_nchw.shape[3]) == plan["in_hw"], \
            "model plan was built for a different input spatial size"
        n = x_nchw.shape[0]
        bb = min(32, _round_up(max(n, 1), 8))      # samples per grid step
        n_pad = _round_up(n, bb)
        grid = n_pad // bb

        x = jnp.transpose(x_nchw, (0, 2, 3, 1)).reshape(n, f_in).astype(CDT)
        if n_pad != n:
            x = jnp.pad(x, ((0, n_pad - n), (0, 0)))

        in_specs = [
            pl.BlockSpec((bb, f_in), lambda b: (b, 0)),
            pl.BlockSpec(stem.shape, lambda b: (0, 0)),
            pl.BlockSpec(pool.shape, lambda b: (0, 0)),
            pl.BlockSpec(bank.shape, lambda b: (0, 0, 0)),
        ]
        out = pl.pallas_call(
            kernel,
            grid=(grid,),
            out_shape=jax.ShapeDtypeStruct((n_pad, pad), jnp.float32),
            in_specs=in_specs,
            out_specs=pl.BlockSpec((bb, pad), lambda b: (b, 0)),
            compiler_params=pltpu.CompilerParams(
                dimension_semantics=("parallel",)),   # v7x: steps split across TCs
        )(x, stem, pool, bank)
        return out[:n, :NUM_OUT]

    return forward


# ------------------------------------ main ------------------------------------
if __name__ == "__main__":
    key = jax.random.PRNGKey(0)
    kp, kx = jax.random.split(key)
    plan, consts = init_model(kp, in_hw=(16, 16))
    x = jax.random.normal(kx, (2, NUM_CH_IN, 16, 16), dtype=jnp.float32)  # NCHW
    fwd = jax.jit(make_forward(plan, consts))
    out = fwd(x)
    jax.block_until_ready(out)
    assert out.shape == (2, NUM_OUT) and out.dtype == jnp.float32
    print("KERNEL_OK")
</pallas_src>

<mosaic_0001>
module attributes {stable_mosaic.version = 11 : i64} {
  func.func @kernel(%arg0: i32, %arg1: memref<8x1024xbf16, #tpu.memory_space<vmem>>, %arg2: memref<1024x512xbf16, #tpu.memory_space<vmem>>, %arg3: memref<512x1152xbf16, #tpu.memory_space<vmem>>, %arg4: memref<11x128x128xbf16, #tpu.memory_space<vmem>>, %arg5: memref<8x128xf32, #tpu.memory_space<vmem>>) attributes {dimension_semantics = [#tpu.dimension_semantics<parallel>], iteration_bounds = array<i64: 1>, scalar_prefetch = 0 : i64, scratch_operands = 0 : i64, tpu.core_type = #tpu.core_type<tc>, window_params = [{transform_indices = @transform_0, window_bounds = array<i64: 8, 1024>}, {pipeline_mode = #tpu.pipeline_mode<synchronous>, transform_indices = @transform_1, window_bounds = array<i64: 1024, 512>}, {pipeline_mode = #tpu.pipeline_mode<synchronous>, transform_indices = @transform_2, window_bounds = array<i64: 512, 1152>}, {pipeline_mode = #tpu.pipeline_mode<synchronous>, transform_indices = @transform_3, window_bounds = array<i64: 11, 128, 128>}, {transform_indices = @transform_4, window_bounds = array<i64: 8, 128>}]} {
    %c0 = arith.constant 0 : index
    %c0_0 = arith.constant 0 : index
    %0 = vector.load %arg1[%c0, %c0_0] : memref<8x1024xbf16, #tpu.memory_space<vmem>>, vector<8x1024xbf16>
    %c0_1 = arith.constant 0 : index
    %c0_2 = arith.constant 0 : index
    %1 = vector.load %arg2[%c0_1, %c0_2] : memref<1024x512xbf16, #tpu.memory_space<vmem>>, vector<1024x512xbf16>
    %cst = arith.constant dense<0.000000e+00> : vector<8x512xf32>
    %2 = tpu.matmul %0, %1, %cst {dimension_numbers = #tpu.dot_dimension_numbers<[1], [0], [0], [1], [0, 0, 1, 1], [], []>} : vector<8x1024xbf16>, vector<1024x512xbf16>, vector<8x512xf32> -> vector<8x512xf32>
    %cst_3 = arith.constant 0.000000e+00 : f32
    %3 = vector.broadcast %cst_3 : f32 to vector<8x512xf32>
    %4 = arith.maximumf %2, %3 : vector<8x512xf32>
    %5 = arith.truncf %4 : vector<8x512xf32> to vector<8x512xbf16>
    %c0_4 = arith.constant 0 : index
    %c0_5 = arith.constant 0 : index
    %6 = vector.load %arg3[%c0_4, %c0_5] : memref<512x1152xbf16, #tpu.memory_space<vmem>>, vector<512x1152xbf16>
    %cst_6 = arith.constant dense<0.000000e+00> : vector<8x1152xf32>
    %7 = tpu.matmul %5, %6, %cst_6 {dimension_numbers = #tpu.dot_dimension_numbers<[1], [0], [0], [1], [0, 0, 1, 1], [], []>} : vector<8x512xbf16>, vector<512x1152xbf16>, vector<8x1152xf32> -> vector<8x1152xf32>
    %8 = vector.extract_strided_slice %7 {offsets = [0, 0], sizes = [8, 128], strides = [1, 1]} : vector<8x1152xf32> to vector<8x128xf32>
    %9 = vector.extract_strided_slice %7 {offsets = [0, 128], sizes = [8, 128], strides = [1, 1]} : vector<8x1152xf32> to vector<8x128xf32>
    %10 = arith.maximumf %8, %9 : vector<8x128xf32>
    %11 = vector.extract_strided_slice %7 {offsets = [0, 256], sizes = [8, 128], strides = [1, 1]} : vector<8x1152xf32> to vector<8x128xf32>
    %12 = arith.maximumf %10, %11 : vector<8x128xf32>
    %13 = vector.extract_strided_slice %7 {offsets = [0, 384], sizes = [8, 128], strides = [1, 1]} : vector<8x1152xf32> to vector<8x128xf32>
    %14 = arith.maximumf %12, %13 : vector<8x128xf32>
    %15 = vector.extract_strided_slice %7 {offsets = [0, 512], sizes = [8, 128], strides = [1, 1]} : vector<8x1152xf32> to vector<8x128xf32>
    %16 = arith.maximumf %14, %15 : vector<8x128xf32>
    %17 = vector.extract_strided_slice %7 {offsets = [0, 640], sizes = [8, 128], strides = [1, 1]} : vector<8x1152xf32> to vector<8x128xf32>
    %18 = arith.maximumf %16, %17 : vector<8x128xf32>
    %19 = vector.extract_strided_slice %7 {offsets = [0, 768], sizes = [8, 128], strides = [1, 1]} : vector<8x1152xf32> to vector<8x128xf32>
    %20 = arith.maximumf %18, %19 : vector<8x128xf32>
    %21 = vector.extract_strided_slice %7 {offsets = [0, 896], sizes = [8, 128], strides = [1, 1]} : vector<8x1152xf32> to vector<8x128xf32>
    %22 = arith.maximumf %20, %21 : vector<8x128xf32>
    %23 = vector.extract_strided_slice %7 {offsets = [0, 1024], sizes = [8, 128], strides = [1, 1]} : vector<8x1152xf32> to vector<8x128xf32>
    %24 = arith.maximumf %22, %23 : vector<8x128xf32>
    %25 = arith.truncf %24 : vector<8x128xf32> to vector<8x128xbf16>
    %c0_7 = arith.constant 0 : index
    %c0_8 = arith.constant 0 : index
    %c0_9 = arith.constant 0 : index
    %26 = vector.load %arg4[%c0_7, %c0_8, %c0_9] : memref<11x128x128xbf16, #tpu.memory_space<vmem>>, vector<1x128x128xbf16>
    %27 = vector.shape_cast %26 : vector<1x128x128xbf16> to vector<128x128xbf16>
    %cst_10 = arith.constant dense<0.000000e+00> : vector<8x128xf32>
    %28 = tpu.matmul %25, %27, %cst_10 {dimension_numbers = #tpu.dot_dimension_numbers<[1], [0], [0], [1], [0, 0, 1, 1], [], []>} : vector<8x128xbf16>, vector<128x128xbf16>, vector<8x128xf32> -> vector<8x128xf32>
    %cst_11 = arith.constant 0.000000e+00 : f32
    %29 = vector.broadcast %cst_11 : f32 to vector<8x128xf32>
    %30 = arith.maximumf %28, %29 : vector<8x128xf32>
    %31 = arith.truncf %30 : vector<8x128xf32> to vector<8x128xbf16>
    %c1 = arith.constant 1 : index
    %c0_12 = arith.constant 0 : index
    %c0_13 = arith.constant 0 : index
    %32 = vector.load %arg4[%c1, %c0_12, %c0_13] : memref<11x128x128xbf16, #tpu.memory_space<vmem>>, vector<1x128x128xbf16>
    %33 = vector.shape_cast %32 : vector<1x128x128xbf16> to vector<128x128xbf16>
    %cst_14 = arith.constant dense<0.000000e+00> : vector<8x128xf32>
    %34 = tpu.matmul %31, %33, %cst_14 {dimension_numbers = #tpu.dot_dimension_numbers<[1], [0], [0], [1], [0, 0, 1, 1], [], []>} : vector<8x128xbf16>, vector<128x128xbf16>, vector<8x128xf32> -> vector<8x128xf32>
    %35 = arith.addf %34, %24 : vector<8x128xf32>
    %cst_15 = arith.constant 0.000000e+00 : f32
    %36 = vector.broadcast %cst_15 : f32 to vector<8x128xf32>
    %37 = arith.maximumf %35, %36 : vector<8x128xf32>
    %38 = arith.truncf %37 : vector<8x128xf32> to vector<8x128xbf16>
    %c2 = arith.constant 2 : index
    %c0_16 = arith.constant 0 : index
    %c0_17 = arith.constant 0 : index
    %39 = vector.load %arg4[%c2, %c0_16, %c0_17] : memref<11x128x128xbf16, #tpu.memory_space<vmem>>, vector<1x128x128xbf16>
    %40 = vector.shape_cast %39 : vector<1x128x128xbf16> to vector<128x128xbf16>
    %cst_18 = arith.constant dense<0.000000e+00> : vector<8x128xf32>
    %41 = tpu.matmul %38, %40, %cst_18 {dimension_numbers = #tpu.dot_dimension_numbers<[1], [0], [0], [1], [0, 0, 1, 1], [], []>} : vector<8x128xbf16>, vector<128x128xbf16>, vector<8x128xf32> -> vector<8x128xf32>
    %cst_19 = arith.constant 0.000000e+00 : f32
    %42 = vector.broadcast %cst_19 : f32 to vector<8x128xf32>
    %43 = arith.maximumf %41, %42 : vector<8x128xf32>
    %44 = arith.truncf %43 : vector<8x128xf32> to vector<8x128xbf16>
    %c3 = arith.constant 3 : index
    %c0_20 = arith.constant 0 : index
    %c0_21 = arith.constant 0 : index
    %45 = vector.load %arg4[%c3, %c0_20, %c0_21] : memref<11x128x128xbf16, #tpu.memory_space<vmem>>, vector<1x128x128xbf16>
    %46 = vector.shape_cast %45 : vector<1x128x128xbf16> to vector<128x128xbf16>
    %cst_22 = arith.constant dense<0.000000e+00> : vector<8x128xf32>
    %47 = tpu.matmul %44, %46, %cst_22 {dimension_numbers = #tpu.dot_dimension_numbers<[1], [0], [0], [1], [0, 0, 1, 1], [], []>} : vector<8x128xbf16>, vector<128x128xbf16>, vector<8x128xf32> -> vector<8x128xf32>
    %c4 = arith.constant 4 : index
    %c0_23 = arith.constant 0 : index
    %c0_24 = arith.constant 0 : index
    %48 = vector.load %arg4[%c4, %c0_23, %c0_24] : memref<11x128x128xbf16, #tpu.memory_space<vmem>>, vector<1x128x128xbf16>
    %49 = vector.shape_cast %48 : vector<1x128x128xbf16> to vector<128x128xbf16>
    %cst_25 = arith.constant dense<0.000000e+00> : vector<8x128xf32>
    %50 = tpu.matmul %38, %49, %cst_25 {dimension_numbers = #tpu.dot_dimension_numbers<[1], [0], [0], [1], [0, 0, 1, 1], [], []>} : vector<8x128xbf16>, vector<128x128xbf16>, vector<8x128xf32> -> vector<8x128xf32>
    %51 = arith.addf %47, %50 : vector<8x128xf32>
    %cst_26 = arith.constant 0.000000e+00 : f32
    %52 = vector.broadcast %cst_26 : f32 to vector<8x128xf32>
    %53 = arith.maximumf %51, %52 : vector<8x128xf32>
    %54 = arith.truncf %53 : vector<8x128xf32> to vector<8x128xbf16>
    %c5 = arith.constant 5 : index
    %c0_27 = arith.constant 0 : index
    %c0_28 = arith.constant 0 : index
    %55 = vector.load %arg4[%c5, %c0_27, %c0_28] : memref<11x128x128xbf16, #tpu.memory_space<vmem>>, vector<1x128x128xbf16>
    %56 = vector.shape_cast %55 : vector<1x128x128xbf16> to vector<128x128xbf16>
    %cst_29 = arith.constant dense<0.000000e+00> : vector<8x128xf32>
    %57 = tpu.matmul %54, %56, %cst_29 {dimension_numbers = #tpu.dot_dimension_numbers<[1], [0], [0], [1], [0, 0, 1, 1], [], []>} : vector<8x128xbf16>, vector<128x128xbf16>, vector<8x128xf32> -> vector<8x128xf32>
    %cst_30 = arith.constant 0.000000e+00 : f32
    %58 = vector.broadcast %cst_30 : f32 to vector<8x128xf32>
    %59 = arith.maximumf %57, %58 : vector<8x128xf32>
    %60 = arith.truncf %59 : vector<8x128xf32> to vector<8x128xbf16>
    %c6 = arith.constant 6 : index
    %c0_31 = arith.constant 0 : index
    %c0_32 = arith.constant 0 : index
    %61 = vector.load %arg4[%c6, %c0_31, %c0_32] : memref<11x128x128xbf16, #tpu.memory_space<vmem>>, vector<1x128x128xbf16>
    %62 = vector.shape_cast %61 : vector<1x128x128xbf16> to vector<128x128xbf16>
    %cst_33 = arith.constant dense<0.000000e+00> : vector<8x128xf32>
    %63 = tpu.matmul %60, %62, %cst_33 {dimension_numbers = #tpu.dot_dimension_numbers<[1], [0], [0], [1], [0, 0, 1, 1], [], []>} : vector<8x128xbf16>, vector<128x128xbf16>, vector<8x128xf32> -> vector<8x128xf32>
    %c7 = arith.constant 7 : index
    %c0_34 = arith.constant 0 : index
    %c0_35 = arith.constant 0 : index
    %64 = vector.load %arg4[%c7, %c0_34, %c0_35] : memref<11x128x128xbf16, #tpu.memory_space<vmem>>, vector<1x128x128xbf16>
    %65 = vector.shape_cast %64 : vector<1x128x128xbf16> to vector<128x128xbf16>
    %cst_36 = arith.constant dense<0.000000e+00> : vector<8x128xf32>
    %66 = tpu.matmul %54, %65, %cst_36 {dimension_numbers = #tpu.dot_dimension_numbers<[1], [0], [0], [1], [0, 0, 1, 1], [], []>} : vector<8x128xbf16>, vector<128x128xbf16>, vector<8x128xf32> -> vector<8x128xf32>
    %67 = arith.addf %63, %66 : vector<8x128xf32>
    %cst_37 = arith.constant 0.000000e+00 : f32
    %68 = vector.broadcast %cst_37 : f32 to vector<8x128xf32>
    %69 = arith.maximumf %67, %68 : vector<8x128xf32>
    %70 = arith.truncf %69 : vector<8x128xf32> to vector<8x128xbf16>
    %c8 = arith.constant 8 : index
    %c0_38 = arith.constant 0 : index
    %c0_39 = arith.constant 0 : index
    %71 = vector.load %arg4[%c8, %c0_38, %c0_39] : memref<11x128x128xbf16, #tpu.memory_space<vmem>>, vector<1x128x128xbf16>
    %72 = vector.shape_cast %71 : vector<1x128x128xbf16> to vector<128x128xbf16>
    %cst_40 = arith.constant dense<0.000000e+00> : vector<8x128xf32>
    %73 = tpu.matmul %70, %72, %cst_40 {dimension_numbers = #tpu.dot_dimension_numbers<[1], [0], [0], [1], [0, 0, 1, 1], [], []>} : vector<8x128xbf16>, vector<128x128xbf16>, vector<8x128xf32> -> vector<8x128xf32>
    %cst_41 = arith.constant 0.000000e+00 : f32
    %74 = vector.broadcast %cst_41 : f32 to vector<8x128xf32>
    %75 = arith.maximumf %73, %74 : vector<8x128xf32>
    %76 = arith.truncf %75 : vector<8x128xf32> to vector<8x128xbf16>
    %c9 = arith.constant 9 : index
    %c0_42 = arith.constant 0 : index
    %c0_43 = arith.constant 0 : index
    %77 = vector.load %arg4[%c9, %c0_42, %c0_43] : memref<11x128x128xbf16, #tpu.memory_space<vmem>>, vector<1x128x128xbf16>
    %78 = vector.shape_cast %77 : vector<1x128x128xbf16> to vector<128x128xbf16>
    %cst_44 = arith.constant dense<0.000000e+00> : vector<8x128xf32>
    %79 = tpu.matmul %76, %78, %cst_44 {dimension_numbers = #tpu.dot_dimension_numbers<[1], [0], [0], [1], [0, 0, 1, 1], [], []>} : vector<8x128xbf16>, vector<128x128xbf16>, vector<8x128xf32> -> vector<8x128xf32>
    %c10 = arith.constant 10 : index
    %c0_45 = arith.constant 0 : index
    %c0_46 = arith.constant 0 : index
    %80 = vector.load %arg4[%c10, %c0_45, %c0_46] : memref<11x128x128xbf16, #tpu.memory_space<vmem>>, vector<1x128x128xbf16>
    %81 = vector.shape_cast %80 : vector<1x128x128xbf16> to vector<128x128xbf16>
    %cst_47 = arith.constant dense<0.000000e+00> : vector<8x128xf32>
    %82 = tpu.matmul %70, %81, %cst_47 {dimension_numbers = #tpu.dot_dimension_numbers<[1], [0], [0], [1], [0, 0, 1, 1], [], []>} : vector<8x128xbf16>, vector<128x128xbf16>, vector<8x128xf32> -> vector<8x128xf32>
    %83 = arith.addf %79, %82 : vector<8x128xf32>
    %cst_48 = arith.constant 0.000000e+00 : f32
    %84 = vector.broadcast %cst_48 : f32 to vector<8x128xf32>
    %85 = arith.maximumf %83, %84 : vector<8x128xf32>
    %c0_49 = arith.constant 0 : index
    %c0_50 = arith.constant 0 : index
    %86 = vector.load %arg5[%c0_49, %c0_50] : memref<8x128xf32, #tpu.memory_space<vmem>>, vector<8x128xf32>
    tpu.vector_store %arg5[%c0_49, %c0_50], %85 {strides = array<i32>} : memref<8x128xf32, #tpu.memory_space<vmem>>, vector<8x128xf32>,
    return
  }
  func.func @transform_0(%arg0: i32) -> (i32, i32) {
    %c0_i32 = arith.constant 0 : i32
    %c0_i32_0 = arith.constant 0 : i32
    return %arg0, %c0_i32 : i32, i32
  }
  func.func @transform_1(%arg0: i32) -> (i32, i32) {
    %c0_i32 = arith.constant 0 : i32
    %c0_i32_0 = arith.constant 0 : i32
    %c0_i32_1 = arith.constant 0 : i32
    return %c0_i32, %c0_i32_0 : i32, i32
  }
  func.func @transform_2(%arg0: i32) -> (i32, i32) {
    %c0_i32 = arith.constant 0 : i32
    %c0_i32_0 = arith.constant 0 : i32
    %c0_i32_1 = arith.constant 0 : i32
    return %c0_i32, %c0_i32_0 : i32, i32
  }
  func.func @transform_3(%arg0: i32) -> (i32, i32, i32) {
    %c0_i32 = arith.constant 0 : i32
    %c0_i32_0 = arith.constant 0 : i32
    %c0_i32_1 = arith.constant 0 : i32
    %c0_i32_2 = arith.constant 0 : i32
    return %c0_i32, %c0_i32_0, %c0_i32_1 : i32, i32, i32
  }
  func.func @transform_4(%arg0: i32) -> (i32, i32) {
    %c0_i32 = arith.constant 0 : i32
    %c0_i32_0 = arith.constant 0 : i32
    return %arg0, %c0_i32 : i32, i32
  }
}

</mosaic_0001>

<bundles_post_ra>
// kernel: forward.1
= control target key start
LH: loop header
LB: loop body
LE: loop exit
PB: predicated region body
PF: predicated region fallthrough
CT: control target
= control target key end

     0   :  { %vm7419_vm0 = vmmov 0   ;;  %s9520_s1 = inlined_call_operand.vmem [shape: bf16[1024,512], index: 1, kind: input, shape index: {}]   ;;  %s9521_s0 = inlined_call_operand.vmem [shape: bf16[8,1024], index: 0, kind: input, shape index: {}]   ;;  %s9522_s2 = inlined_call_operand.vmem [shape: bf16[512,1152], index: 2, kind: input, shape index: {}]   ;;  %s9523_s3 = inlined_call_operand.vmem [shape: bf16[11,128,128], index: 3, kind: input, shape index: {}]   ;;  %s9524_s4 = inlined_call_operand.vmem [shape: f32[8,128], index: 4, kind: output, shape index: {}]  }
   0x1   :  { %v6522_v0 = vld [vmem:[%s9520_s1 + $0x4] ss:$16 sps:$4 sm:$0xff]   ;;  %v6524_v1 = vld [vmem:[%s9520_s1 + $0xc] ss:$16 sps:$4 sm:$0xff]   ;;  %v6526_v2 = vld [vmem:[%s9520_s1] ss:$16 sps:$4 sm:$0xff]  }
   0x2   :  { %1586 = vmatprep.subr.bf16.mxu0 %v6522_v0  ;;  %v6527_v3 = vld [vmem:[%s9520_s1 + $0x8] ss:$16 sps:$4 sm:$0xff]   ;;  %1750 = vmatprep.subr.bf16.mxu1 %v6524_v1  ;;  %v6528_v4 = vld [vmem:[%s9520_s1 + $0x24] ss:$16 sps:$4 sm:$0xff]   ;;  %v6530_v5 = vld [vmem:[%s9520_s1 + $0x2c] ss:$16 sps:$4 sm:$0xff]  }
   0x3   :  { %1587 = vmatpush1.bf16.msra.mxu0 %v6526_v2  ;;  %1751 = vmatpush1.bf16.msra.mxu1 %v6527_v3  ;;  %v6532_v6 = vld [vmem:[%s9520_s1 + $0x20] ss:$16 sps:$4 sm:$0xff]   ;;  %v6533_v7 = vld [vmem:[%s9520_s1 + $0x28] ss:$16 sps:$4 sm:$0xff]   ;;  %v6534_v8 = vld [vmem:[%s9520_s1 + $0x44] ss:$16 sps:$4 sm:$0xff]  }
   0x4   :  { %1588 = vmatprep.subr.bf16.mxu0 %v6528_v4  ;;  %1752 = vmatprep.subr.bf16.mxu1 %v6530_v5  ;;  %v6536_v9 = vld [vmem:[%s9520_s1 + $0x4c] ss:$16 sps:$4 sm:$0xff]   ;;  %v6538_v10 = vld [vmem:[%s9520_s1 + $0x40] ss:$16 sps:$4 sm:$0xff]   ;;  %v6539_v11 = vld [vmem:[%s9520_s1 + $0x48] ss:$16 sps:$4 sm:$0xff]  }
   0x5   :  { %v6540_v12 = vld [vmem:[%s9520_s1 + $0x64] ss:$16 sps:$4 sm:$0xff]   ;;  %v6542_v13 = vld [vmem:[%s9520_s1 + $0x6c] ss:$16 sps:$4 sm:$0xff]   ;;  %v6544_v14 = vld [vmem:[%s9520_s1 + $0x60] ss:$16 sps:$4 sm:$0xff]  }
   0x6   :  { %v6545_v15 = vld [vmem:[%s9520_s1 + $0x68] ss:$16 sps:$4 sm:$0xff]   ;;  %v6546_v16 = vld [vmem:[%s9520_s1 + $0x84] ss:$16 sps:$4 sm:$0xff]   ;;  %v6548_v17 = vld [vmem:[%s9520_s1 + $0x8c] ss:$16 sps:$4 sm:$0xff]  }
   0x7   :  { %1589 = vmatpush1.bf16.msra.mxu0 %v6532_v6  ;;  %1753 = vmatpush1.bf16.msra.mxu1 %v6533_v7  ;;  %v6550_v18 = vld [vmem:[%s9520_s1 + $0x80] ss:$16 sps:$4 sm:$0xff]   ;;  %v6551_v19 = vld [vmem:[%s9520_s1 + $0x88] ss:$16 sps:$4 sm:$0xff]   ;;  %v6552_v20 = vld [vmem:[%s9520_s1 + $0xa4] ss:$16 sps:$4 sm:$0xff]  }
   0x8   :  { %1590 = vmatprep.subr.bf16.mxu0 %v6534_v8  ;;  %1754 = vmatprep.subr.bf16.mxu1 %v6536_v9  ;;  %v6554_v21 = vld [vmem:[%s9520_s1 + $0xac] ss:$16 sps:$4 sm:$0xff]   ;;  %v6556_v22 = vld [vmem:[%s9520_s1 + $0xa0] ss:$16 sps:$4 sm:$0xff]   ;;  %v6557_v23 = vld [vmem:[%s9520_s1 + $0xa8] ss:$16 sps:$4 sm:$0xff]  }
   0x9   :  { %v6558_v24 = vld [vmem:[%s9520_s1 + $0xc4] ss:$16 sps:$4 sm:$0xff]   ;;  %v6560_v25 = vld [vmem:[%s9520_s1 + $0xcc] ss:$16 sps:$4 sm:$0xff]   ;;  %v6562_v26 = vld [vmem:[%s9520_s1 + $0xc0] ss:$16 sps:$4 sm:$0xff]  }
   0xa   :  { %v6563_v27 = vld [vmem:[%s9520_s1 + $0xc8] ss:$16 sps:$4 sm:$0xff]   ;;  %v6564_v28 = vld [vmem:[%s9520_s1 + $0xe4] ss:$16 sps:$4 sm:$0xff]   ;;  %v6566_v29 = vld [vmem:[%s9520_s1 + $0xec] ss:$16 sps:$4 sm:$0xff]  }
   0xb   :  { %1591 = vmatpush1.bf16.msra.mxu0 %v6538_v10  ;;  %1755 = vmatpush1.bf16.msra.mxu1 %v6539_v11  ;;  %v6568_v30 = vld [vmem:[%s9520_s1 + $0xe0] ss:$16 sps:$4 sm:$0xff]   ;;  %v6569_v31 = vld [vmem:[%s9520_s1 + $0xe8] ss:$16 sps:$4 sm:$0xff]   ;;  %v6570_v32 = vld [vmem:[%s9520_s1 + $0x104] ss:$16 sps:$4 sm:$0xff]  }
   0xc   :  { %1592 = vmatprep.subr.bf16.mxu0 %v6540_v12  ;;  %1756 = vmatprep.subr.bf16.mxu1 %v6542_v13  ;;  %v6572_v33 = vld [vmem:[%s9520_s1 + $0x10c] ss:$16 sps:$4 sm:$0xff]   ;;  %v6574_v34 = vld [vmem:[%s9520_s1 + $0x100] ss:$16 sps:$4 sm:$0xff]   ;;  %v6575_v35 = vld [vmem:[%s9520_s1 + $0x108] ss:$16 sps:$4 sm:$0xff]  }
   0xd   :  { %v6576_v36 = vld [vmem:[%s9520_s1 + $0x124] ss:$16 sps:$4 sm:$0xff]   ;;  %v6578_v37 = vld [vmem:[%s9520_s1 + $0x12c] ss:$16 sps:$4 sm:$0xff]   ;;  %v6580_v38 = vld [vmem:[%s9520_s1 + $0x120] ss:$16 sps:$4 sm:$0xff]  }
   0xe   :  { %v6581_v39 = vld [vmem:[%s9520_s1 + $0x128] ss:$16 sps:$4 sm:$0xff]   ;;  %v6582_v40 = vld [vmem:[%s9520_s1 + $0x144] ss:$16 sps:$4 sm:$0xff]   ;;  %v6584_v41 = vld [vmem:[%s9520_s1 + $0x14c] ss:$16 sps:$4 sm:$0xff]  }
   0xf   :  { %1593 = vmatpush1.bf16.msra.mxu0 %v6544_v14  ;;  %1757 = vmatpush1.bf16.msra.mxu1 %v6545_v15  ;;  %v6586_v42 = vld [vmem:[%s9520_s1 + $0x140] ss:$16 sps:$4 sm:$0xff]   ;;  %v6587_v43 = vld [vmem:[%s9520_s1 + $0x148] ss:$16 sps:$4 sm:$0xff]   ;;  %v6588_v44 = vld [vmem:[%s9520_s1 + $0x164] ss:$16 sps:$4 sm:$0xff]  }
  0x10   :  { %1594 = vmatprep.subr.bf16.mxu0 %v6546_v16  ;;  %1758 = vmatprep.subr.bf16.mxu1 %v6548_v17  ;;  %v6590_v45 = vld [vmem:[%s9520_s1 + $0x16c] ss:$16 sps:$4 sm:$0xff]   ;;  %v18_v46 = vld [vmem:[%s9521_s0] sm:$0xff]  ;;  %v6593_v49 = vld [vmem:[%s9520_s1 + $0x168] ss:$16 sps:$4 sm:$0xff]  }
  0x11   :  { %v6592_v47 = vld [vmem:[%s9520_s1 + $0x160] ss:$16 sps:$4 sm:$0xff]   ;;  %v5306_v48 = vcombine.high %v18_v46, %v18_v46  ;;  %v6594_v50 = vld [vmem:[%s9520_s1 + $0x184] ss:$16 sps:$4 sm:$0xff]   ;;  %v6596_v51 = vld [vmem:[%s9520_s1 + $0x18c] ss:$16 sps:$4 sm:$0xff]   ;;  %v5305_v4 = vcombine.low %v18_v46, %v18_v46 }
  0x12   :  { %v6598_v52 = vld [vmem:[%s9520_s1 + $0x180] ss:$16 sps:$4 sm:$0xff]   ;;  %v6599_v53 = vld [vmem:[%s9520_s1 + $0x188] ss:$16 sps:$4 sm:$0xff]   ;;  %v6600_v54 = vld [vmem:[%s9520_s1 + $0x1a4] ss:$16 sps:$4 sm:$0xff]  }
  0x13   :  { %1595 = vmatpush1.bf16.msra.mxu0 %v6550_v18  ;;  %1759 = vmatpush1.bf16.msra.mxu1 %v6551_v19  ;;  %v6602_v55 = vld [vmem:[%s9520_s1 + $0x1ac] ss:$16 sps:$4 sm:$0xff]   ;;  %v6604_v56 = vld [vmem:[%s9520_s1 + $0x1a0] ss:$16 sps:$4 sm:$0xff]   ;;  %v6605_v57 = vld [vmem:[%s9520_s1 + $0x1a8] ss:$16 sps:$4 sm:$0xff]  }
  0x14   :  { %1596 = vmatprep.subr.bf16.mxu0 %v6552_v20  ;;  %1760 = vmatprep.subr.bf16.mxu1 %v6554_v21  ;;  %v6606_v58 = vld [vmem:[%s9520_s1 + $0x1c4] ss:$16 sps:$4 sm:$0xff]   ;;  %v6608_v59 = vld [vmem:[%s9520_s1 + $0x1cc] ss:$16 sps:$4 sm:$0xff]   ;;  %v6610_v60 = vld [vmem:[%s9520_s1 + $0x1c0] ss:$16 sps:$4 sm:$0xff]  }
  0x15   :  { %1618 = vmatprep.mubr.bf16.mxu0 %v5306_v48  ;;  %1782 = vmatprep.mubr.bf16.mxu1 %v5306_v48  ;;  %v6611_v61 = vld [vmem:[%s9520_s1 + $0x1c8] ss:$16 sps:$4 sm:$0xff]   ;;  %v6612_v62 = vld [vmem:[%s9520_s1 + $0x1e4] ss:$16 sps:$4 sm:$0xff]   ;;  %v6614_v63 = vld [vmem:[%s9520_s1 + $0x1ec] ss:$16 sps:$4 sm:$0xff]  }
  0x16   :  { %v6616_v0 = vld [vmem:[%s9520_s1 + $0x1e0] ss:$16 sps:$4 sm:$0xff]   ;;  %v6617_v1 = vld [vmem:[%s9520_s1 + $0x1e8] ss:$16 sps:$4 sm:$0xff]   ;;  %v6622_v2 = vld [vmem:[%s9520_s1 + $0x204] ss:$16 sps:$4 sm:$0xff]  }
  0x17   :  { %1597 = vmatpush1.bf16.msra.mxu0 %v6556_v22  ;;  %1761 = vmatpush1.bf16.msra.mxu1 %v6557_v23  ;;  %v6625_v3 = vld [vmem:[%s9520_s1 + $0x20c] ss:$16 sps:$4 sm:$0xff]   ;;  %v6620_v5 = vld [vmem:[%s9520_s1 + $0x200] ss:$16 sps:$4 sm:$0xff]   ;;  %v6623_v6 = vld [vmem:[%s9520_s1 + $0x208] ss:$16 sps:$4 sm:$0xff]  }
  0x18   :  { %1598 = vmatprep.subr.bf16.mxu0 %v6558_v24  ;;  %1762 = vmatprep.subr.bf16.mxu1 %v6560_v25  ;;  %v6628_v7 = vld [vmem:[%s9520_s1 + $0x224] ss:$16 sps:$4 sm:$0xff]   ;;  %v6631_v8 = vld [vmem:[%s9520_s1 + $0x22c] ss:$16 sps:$4 sm:$0xff]   ;;  %v6626_v9 = vld [vmem:[%s9520_s1 + $0x220] ss:$16 sps:$4 sm:$0xff]  }
  0x19   :  { %v6629_v10 = vld [vmem:[%s9520_s1 + $0x228] ss:$16 sps:$4 sm:$0xff]   ;;  %v6634_v11 = vld [vmem:[%s9520_s1 + $0x244] ss:$16 sps:$4 sm:$0xff]   ;;  %v6637_v12 = vld [vmem:[%s9520_s1 + $0x24c] ss:$16 sps:$4 sm:$0xff]  }
  0x1a   :  { %v6632_v13 = vld [vmem:[%s9520_s1 + $0x240] ss:$16 sps:$4 sm:$0xff]   ;;  %v6635_v14 = vld [vmem:[%s9520_s1 + $0x248] ss:$16 sps:$4 sm:$0xff]   ;;  %v6640_v15 = vld [vmem:[%s9520_s1 + $0x264] ss:$16 sps:$4 sm:$0xff]  }
  0x1b   :  { %1599 = vmatpush1.bf16.msra.mxu0 %v6562_v26  ;;  %1763 = vmatpush1.bf16.msra.mxu1 %v6563_v27  ;;  %v6643_v16 = vld [vmem:[%s9520_s1 + $0x26c] ss:$16 sps:$4 sm:$0xff]   ;;  %v6638_v17 = vld [vmem:[%s9520_s1 + $0x260] ss:$16 sps:$4 sm:$0xff]   ;;  %v6641_v18 = vld [vmem:[%s9520_s1 + $0x268] ss:$16 sps:$4 sm:$0xff]  }
  0x1c   :  { %1600 = vmatprep.subr.bf16.mxu0 %v6564_v28  ;;  %1764 = vmatprep.subr.bf16.mxu1 %v6566_v29  ;;  %v6646_v19 = vld [vmem:[%s9520_s1 + $0x284] ss:$16 sps:$4 sm:$0xff]   ;;  %v6649_v20 = vld [vmem:[%s9520_s1 + $0x28c] ss:$16 sps:$4 sm:$0xff]   ;;  %v6644_v21 = vld [vmem:[%s9520_s1 + $0x280] ss:$16 sps:$4 sm:$0xff]  }
  0x1d   :  { %v6647_v22 = vld [vmem:[%s9520_s1 + $0x288] ss:$16 sps:$4 sm:$0xff]   ;;  %v6652_v23 = vld [vmem:[%s9520_s1 + $0x2a4] ss:$16 sps:$4 sm:$0xff]   ;;  %v6655_v24 = vld [vmem:[%s9520_s1 + $0x2ac] ss:$16 sps:$4 sm:$0xff]  }
  0x1e   :  { %v6650_v25 = vld [vmem:[%s9520_s1 + $0x2a0] ss:$16 sps:$4 sm:$0xff]   ;;  %v6653_v26 = vld [vmem:[%s9520_s1 + $0x2a8] ss:$16 sps:$4 sm:$0xff]   ;;  %v6658_v27 = vld [vmem:[%s9520_s1 + $0x2c4] ss:$16 sps:$4 sm:$0xff]  }
  0x1f   :  { %1601 = vmatpush1.bf16.msra.mxu0 %v6568_v30  ;;  %1765 = vmatpush1.bf16.msra.mxu1 %v6569_v31  ;;  %v6661_v28 = vld [vmem:[%s9520_s1 + $0x2cc] ss:$16 sps:$4 sm:$0xff]   ;;  %v6656_v31 = vld [vmem:[%s9520_s1 + $0x2c0] ss:$16 sps:$4 sm:$0xff]   ;;  %v6683_v48 = vld [vmem:[%s9520_s1 + $0x348] ss:$16 sps:$4 sm:$0xff]  }
  0x20   :  { %1602 = vmatprep.subr.bf16.mxu0 %v6570_v32  ;;  %1766 = vmatprep.subr.bf16.mxu1 %v6572_v33  ;;  %v7721_v29 = vld [vmem:[%s9521_s0 + $0x8] sm:$0xff]  ;;  %v6664_v33 = vld [vmem:[%s9520_s1 + $0x2e4] ss:$16 sps:$4 sm:$0xff]  }
  0x21   :  { %v5308_v30 = vcombine.high %v7721_v29, %v7721_v29  ;;  %v6659_v32 = vld [vmem:[%s9520_s1 + $0x2c8] ss:$16 sps:$4 sm:$0xff]   ;;  %v6685_v46 = vld [vmem:[%s9520_s1 + $0x34c] ss:$16 sps:$4 sm:$0xff]  }
  0x23   :  { %1603 = vmatpush1.bf16.msra.mxu0 %v6574_v34  ;;  %1767 = vmatpush1.bf16.msra.mxu1 %v6575_v35  ;;  %v6667_v34 = vld [vmem:[%s9520_s1 + $0x2ec] ss:$16 sps:$4 sm:$0xff]   ;;  %v6662_v35 = vld [vmem:[%s9520_s1 + $0x2e0] ss:$16 sps:$4 sm:$0xff]  }
  0x24   :  { %1604 = vmatprep.subr.bf16.mxu0 %v6576_v36  ;;  %1768 = vmatprep.subr.bf16.mxu1 %v6578_v37  ;;  %v6665_v36 = vld [vmem:[%s9520_s1 + $0x2e8] ss:$16 sps:$4 sm:$0xff]   ;;  %v6670_v37 = vld [vmem:[%s9520_s1 + $0x304] ss:$16 sps:$4 sm:$0xff]  }
  0x27   :  { %1605 = vmatpush1.bf16.msra.mxu0 %v6580_v38  ;;  %1769 = vmatpush1.bf16.msra.mxu1 %v6581_v39  ;;  %v6673_v38 = vld [vmem:[%s9520_s1 + $0x30c] ss:$16 sps:$4 sm:$0xff]   ;;  %v6668_v39 = vld [vmem:[%s9520_s1 + $0x300] ss:$16 sps:$4 sm:$0xff]  }
  0x28   :  { %1606 = vmatprep.subr.bf16.mxu0 %v6582_v40  ;;  %1770 = vmatprep.subr.bf16.mxu1 %v6584_v41  ;;  %v6671_v40 = vld [vmem:[%s9520_s1 + $0x308] ss:$16 sps:$4 sm:$0xff]   ;;  %v6676_v41 = vld [vmem:[%s9520_s1 + $0x324] ss:$16 sps:$4 sm:$0xff]  }
  0x2b   :  { %1607 = vmatpush1.bf16.msra.mxu0 %v6586_v42  ;;  %1771 = vmatpush1.bf16.msra.mxu1 %v6587_v43  ;;  %v6679_v42 = vld [vmem:[%s9520_s1 + $0x32c] ss:$16 sps:$4 sm:$0xff]   ;;  %v6674_v43 = vld [vmem:[%s9520_s1 + $0x320] ss:$16 sps:$4 sm:$0xff]  }
  0x2c   :  { %1608 = vmatprep.subr.bf16.mxu0 %v6588_v44  ;;  %1772 = vmatprep.subr.bf16.mxu1 %v6590_v45  ;;  %v6677_v44 = vld [vmem:[%s9520_s1 + $0x328] ss:$16 sps:$4 sm:$0xff]   ;;  %v6682_v45 = vld [vmem:[%s9520_s1 + $0x344] ss:$16 sps:$4 sm:$0xff]  }
  0x2f   :  { %1609 = vmatpush1.bf16.msra.mxu0 %v6592_v47  ;;  %1773 = vmatpush1.bf16.msra.mxu1 %v6593_v49  ;;  %v6680_v47 = vld [vmem:[%s9520_s1 + $0x340] ss:$16 sps:$4 sm:$0xff]   ;;  %v6688_v49 = vld [vmem:[%s9520_s1 + $0x364] ss:$16 sps:$4 sm:$0xff]  }
  0x30   :  { %1610 = vmatprep.subr.bf16.mxu0 %v6594_v50  ;;  %1774 = vmatprep.subr.bf16.mxu1 %v6596_v51  ;;  %v6691_v50 = vld [vmem:[%s9520_s1 + $0x36c] ss:$16 sps:$4 sm:$0xff]   ;;  %v6686_v51 = vld [vmem:[%s9520_s1 + $0x360] ss:$16 sps:$4 sm:$0xff]  }
  0x33   :  { %1611 = vmatpush1.bf16.msra.mxu0 %v6598_v52  ;;  %1775 = vmatpush1.bf16.msra.mxu1 %v6599_v53  ;;  %v6689_v52 = vld [vmem:[%s9520_s1 + $0x368] ss:$16 sps:$4 sm:$0xff]   ;;  %v6694_v53 = vld [vmem:[%s9520_s1 + $0x384] ss:$16 sps:$4 sm:$0xff]  }
  0x34   :  { %1612 = vmatprep.subr.bf16.mxu0 %v6600_v54  ;;  %1776 = vmatprep.subr.bf16.mxu1 %v6602_v55  ;;  %v6697_v54 = vld [vmem:[%s9520_s1 + $0x38c] ss:$16 sps:$4 sm:$0xff]   ;;  %v6692_v55 = vld [vmem:[%s9520_s1 + $0x380] ss:$16 sps:$4 sm:$0xff]  }
  0x37   :  { %1613 = vmatpush1.bf16.msra.mxu0 %v6604_v56  ;;  %1777 = vmatpush1.bf16.msra.mxu1 %v6605_v57  ;;  %v6695_v56 = vld [vmem:[%s9520_s1 + $0x388] ss:$16 sps:$4 sm:$0xff]   ;;  %v6700_v57 = vld [vmem:[%s9520_s1 + $0x3a4] ss:$16 sps:$4 sm:$0xff]  }
  0x38   :  { %1614 = vmatprep.subr.bf16.mxu0 %v6606_v58  ;;  %1778 = vmatprep.subr.bf16.mxu1 %v6608_v59  ;;  %v6703_v58 = vld [vmem:[%s9520_s1 + $0x3ac] ss:$16 sps:$4 sm:$0xff]   ;;  %v6698_v59 = vld [vmem:[%s9520_s1 + $0x3a0] ss:$16 sps:$4 sm:$0xff]  }
  0x3b   :  { %1615 = vmatpush1.bf16.msra.mxu0 %v6610_v60  ;;  %1779 = vmatpush1.bf16.msra.mxu1 %v6611_v61  ;;  %v6701_v60 = vld [vmem:[%s9520_s1 + $0x3a8] ss:$16 sps:$4 sm:$0xff]   ;;  %v6706_v61 = vld [vmem:[%s9520_s1 + $0x3c4] ss:$16 sps:$4 sm:$0xff]  }
  0x3c   :  { %1616 = vmatprep.subr.bf16.mxu0 %v6612_v62  ;;  %1780 = vmatprep.subr.bf16.mxu1 %v6614_v63  ;;  %v6709_v62 = vld [vmem:[%s9520_s1 + $0x3cc] ss:$16 sps:$4 sm:$0xff]   ;;  %v6704_v63 = vld [vmem:[%s9520_s1 + $0x3c0] ss:$16 sps:$4 sm:$0xff]  }
  0x3f   :  { %1617 = vmatpush1.bf16.msra.mxu0 %v6616_v0  ;;  %1781 = vmatpush1.bf16.msra.mxu1 %v6617_v1  ;;  %v6707_v0 = vld [vmem:[%s9520_s1 + $0x3c8] ss:$16 sps:$4 sm:$0xff]   ;;  %v6712_v1 = vld [vmem:[%s9520_s1 + $0x3e4] ss:$16 sps:$4 sm:$0xff]  }
  0x40   :  { %1627 = vmatprep.subr.bf16.mxu0 %v6622_v2  ;;  %1791 = vmatprep.subr.bf16.mxu1 %v6625_v3  ;;  %v6715_v2 = vld [vmem:[%s9520_s1 + $0x3ec] ss:$16 sps:$4 sm:$0xff]   ;;  %v6710_v3 = vld [vmem:[%s9520_s1 + $0x3e0] ss:$16 sps:$4 sm:$0xff]  }
  0x42   :  { %1619 = vmatmul.mubr.bf16.vlgmr.msra.gmra.mrb[0].mxu0 %v5305_v4  ;;  %1783 = vmatmul.mubr.bf16.vlgmr.msra.gmra.mrb[0].mxu1 %v5305_v4  ;;  %v6713_v4 = vld [vmem:[%s9520_s1 + $0x3e8] ss:$16 sps:$4 sm:$0xff]  }
  0x43   :  { %1628 = vmatpush1.bf16.msra.mxu0 %v6620_v5  ;;  %1792 = vmatpush1.bf16.msra.mxu1 %v6623_v6  ;;  %v6720_v5 = vld [vmem:[%s9520_s1 + $0x404] ss:$16 sps:$4 sm:$0xff]   ;;  %v6723_v6 = vld [vmem:[%s9520_s1 + $0x40c] ss:$16 sps:$4 sm:$0xff]  }
  0x44   :  { %1629 = vmatprep.subr.bf16.mxu0 %v6628_v7  ;;  %1793 = vmatprep.subr.bf16.mxu1 %v6631_v8  ;;  %v5307_v7 = vcombine.low %v7721_v29, %v7721_v29  ;;  %v6718_v8 = vld [vmem:[%s9520_s1 + $0x400] ss:$16 sps:$4 sm:$0xff]   ;;  %v6753_v29 = vld [vmem:[%s9520_s1 + $0x4ac] ss:$16 sps:$4 sm:$0xff]  }
  0x45   :  { %1659 = vmatprep.mubr.bf16.mxu0 %v5308_v30  ;;  %1823 = vmatprep.mubr.bf16.mxu1 %v5308_v30  ;;  %v6748_v30 = vld [vmem:[%s9520_s1 + $0x4a0] ss:$16 sps:$4 sm:$0xff]  }
  0x47   :  { %1630 = vmatpush1.bf16.msra.mxu0 %v6626_v9  ;;  %1794 = vmatpush1.bf16.msra.mxu1 %v6629_v10  ;;  %v6721_v9 = vld [vmem:[%s9520_s1 + $0x408] ss:$16 sps:$4 sm:$0xff]   ;;  %v6726_v10 = vld [vmem:[%s9520_s1 + $0x424] ss:$16 sps:$4 sm:$0xff]  }
  0x48   :  { %1631 = vmatprep.subr.bf16.mxu0 %v6634_v11  ;;  %1795 = vmatprep.subr.bf16.mxu1 %v6637_v12  ;;  %v7859_v11 = vld [vmem:[%s9521_s0 + $0x10] sm:$0xff]  ;;  %v6729_v12 = vld [vmem:[%s9520_s1 + $0x42c] ss:$16 sps:$4 sm:$0xff]  }
  0x4b   :  { %1632 = vmatpush1.bf16.msra.mxu0 %v6632_v13  ;;  %1796 = vmatpush1.bf16.msra.mxu1 %v6635_v14  ;;  %v5310_v13 = vcombine.high %v7859_v11, %v7859_v11  ;;  %v6724_v14 = vld [vmem:[%s9520_s1 + $0x420] ss:$16 sps:$4 sm:$0xff]  }
  0x4c   :  { %1633 = vmatprep.subr.bf16.mxu0 %v6640_v15  ;;  %1797 = vmatprep.subr.bf16.mxu1 %v6643_v16  ;;  %v6727_v15 = vld [vmem:[%s9520_s1 + $0x428] ss:$16 sps:$4 sm:$0xff]   ;;  %v6732_v16 = vld [vmem:[%s9520_s1 + $0x444] ss:$16 sps:$4 sm:$0xff]  }
  0x4f   :  { %1634 = vmatpush1.bf16.msra.mxu0 %v6638_v17  ;;  %1798 = vmatpush1.bf16.msra.mxu1 %v6641_v18  ;;  %v6735_v17 = vld [vmem:[%s9520_s1 + $0x44c] ss:$16 sps:$4 sm:$0xff]   ;;  %v6730_v18 = vld [vmem:[%s9520_s1 + $0x440] ss:$16 sps:$4 sm:$0xff]  }
  0x50   :  { %1635 = vmatprep.subr.bf16.mxu0 %v6646_v19  ;;  %1799 = vmatprep.subr.bf16.mxu1 %v6649_v20  ;;  %v6733_v19 = vld [vmem:[%s9520_s1 + $0x448] ss:$16 sps:$4 sm:$0xff]   ;;  %v6738_v20 = vld [vmem:[%s9520_s1 + $0x464] ss:$16 sps:$4 sm:$0xff]  }
  0x53   :  { %1636 = vmatpush1.bf16.msra.mxu0 %v6644_v21  ;;  %1800 = vmatpush1.bf16.msra.mxu1 %v6647_v22  ;;  %v6741_v21 = vld [vmem:[%s9520_s1 + $0x46c] ss:$16 sps:$4 sm:$0xff]   ;;  %v6736_v22 = vld [vmem:[%s9520_s1 + $0x460] ss:$16 sps:$4 sm:$0xff]  }
  0x54   :  { %1637 = vmatprep.subr.bf16.mxu0 %v6652_v23  ;;  %1801 = vmatprep.subr.bf16.mxu1 %v6655_v24  ;;  %v6739_v23 = vld [vmem:[%s9520_s1 + $0x468] ss:$16 sps:$4 sm:$0xff]   ;;  %v6744_v24 = vld [vmem:[%s9520_s1 + $0x484] ss:$16 sps:$4 sm:$0xff]  }
  0x57   :  { %1638 = vmatpush1.bf16.msra.mxu0 %v6650_v25  ;;  %1802 = vmatpush1.bf16.msra.mxu1 %v6653_v26  ;;  %v6747_v25 = vld [vmem:[%s9520_s1 + $0x48c] ss:$16 sps:$4 sm:$0xff]   ;;  %v6742_v26 = vld [vmem:[%s9520_s1 + $0x480] ss:$16 sps:$4 sm:$0xff]  }
  0x58   :  { %1639 = vmatprep.subr.bf16.mxu0 %v6658_v27  ;;  %1803 = vmatprep.subr.bf16.mxu1 %v6661_v28  ;;  %v6745_v27 = vld [vmem:[%s9520_s1 + $0x488] ss:$16 sps:$4 sm:$0xff]   ;;  %v6750_v28 = vld [vmem:[%s9520_s1 + $0x4a4] ss:$16 sps:$4 sm:$0xff]  }
  0x5b   :  { %1640 = vmatpush1.bf16.msra.mxu0 %v6656_v31  ;;  %1804 = vmatpush1.bf16.msra.mxu1 %v6659_v32  ;;  %v6751_v31 = vld [vmem:[%s9520_s1 + $0x4a8] ss:$16 sps:$4 sm:$0xff]   ;;  %v6756_v32 = vld [vmem:[%s9520_s1 + $0x4c4] ss:$16 sps:$4 sm:$0xff]  }
  0x5c   :  { %1641 = vmatprep.subr.bf16.mxu0 %v6664_v33  ;;  %1805 = vmatprep.subr.bf16.mxu1 %v6667_v34  ;;  %v6759_v33 = vld [vmem:[%s9520_s1 + $0x4cc] ss:$16 sps:$4 sm:$0xff]   ;;  %v6754_v34 = vld [vmem:[%s9520_s1 + $0x4c0] ss:$16 sps:$4 sm:$0xff]  }
  0x5f   :  { %1642 = vmatpush1.bf16.msra.mxu0 %v6662_v35  ;;  %1806 = vmatpush1.bf16.msra.mxu1 %v6665_v36  ;;  %v6757_v35 = vld [vmem:[%s9520_s1 + $0x4c8] ss:$16 sps:$4 sm:$0xff]   ;;  %v6762_v36 = vld [vmem:[%s9520_s1 + $0x4e4] ss:$16 sps:$4 sm:$0xff]  }
  0x60   :  { %1643 = vmatprep.subr.bf16.mxu0 %v6670_v37  ;;  %1807 = vmatprep.subr.bf16.mxu1 %v6673_v38  ;;  %v6765_v37 = vld [vmem:[%s9520_s1 + $0x4ec] ss:$16 sps:$4 sm:$0xff]   ;;  %v6760_v38 = vld [vmem:[%s9520_s1 + $0x4e0] ss:$16 sps:$4 sm:$0xff]  }
  0x63   :  { %1644 = vmatpush1.bf16.msra.mxu0 %v6668_v39  ;;  %1808 = vmatpush1.bf16.msra.mxu1 %v6671_v40  ;;  %v6763_v39 = vld [vmem:[%s9520_s1 + $0x4e8] ss:$16 sps:$4 sm:$0xff]   ;;  %v6768_v40 = vld [vmem:[%s9520_s1 + $0x504] ss:$16 sps:$4 sm:$0xff]  }
  0x64   :  { %1645 = vmatprep.subr.bf16.mxu0 %v6676_v41  ;;  %1809 = vmatprep.subr.bf16.mxu1 %v6679_v42  ;;  %v6771_v41 = vld [vmem:[%s9520_s1 + $0x50c] ss:$16 sps:$4 sm:$0xff]   ;;  %v6766_v42 = vld [vmem:[%s9520_s1 + $0x500] ss:$16 sps:$4 sm:$0xff]  }
  0x67   :  { %1646 = vmatpush1.bf16.msra.mxu0 %v6674_v43  ;;  %1810 = vmatpush1.bf16.msra.mxu1 %v6677_v44  ;;  %v6769_v43 = vld [vmem:[%s9520_s1 + $0x508] ss:$16 sps:$4 sm:$0xff]   ;;  %v6774_v44 = vld [vmem:[%s9520_s1 + $0x524] ss:$16 sps:$4 sm:$0xff]  }
  0x68   :  { %1647 = vmatprep.subr.bf16.mxu0 %v6682_v45  ;;  %1811 = vmatprep.subr.bf16.mxu1 %v6685_v46  ;;  %v6777_v45 = vld [vmem:[%s9520_s1 + $0x52c] ss:$16 sps:$4 sm:$0xff]   ;;  %v6772_v46 = vld [vmem:[%s9520_s1 + $0x520] ss:$16 sps:$4 sm:$0xff]  }
  0x6b   :  { %1648 = vmatpush1.bf16.msra.mxu0 %v6680_v47  ;;  %1812 = vmatpush1.bf16.msra.mxu1 %v6683_v48  ;;  %v6775_v47 = vld [vmem:[%s9520_s1 + $0x528] ss:$16 sps:$4 sm:$0xff]   ;;  %v6780_v48 = vld [vmem:[%s9520_s1 + $0x544] ss:$16 sps:$4 sm:$0xff]  }
  0x6c   :  { %1649 = vmatprep.subr.bf16.mxu0 %v6688_v49  ;;  %1813 = vmatprep.subr.bf16.mxu1 %v6691_v50  ;;  %v6783_v49 = vld [vmem:[%s9520_s1 + $0x54c] ss:$16 sps:$4 sm:$0xff]   ;;  %v6778_v50 = vld [vmem:[%s9520_s1 + $0x540] ss:$16 sps:$4 sm:$0xff]  }
  0x6f   :  { %1650 = vmatpush1.bf16.msra.mxu0 %v6686_v51  ;;  %1814 = vmatpush1.bf16.msra.mxu1 %v6689_v52  ;;  %v6781_v51 = vld [vmem:[%s9520_s1 + $0x548] ss:$16 sps:$4 sm:$0xff]   ;;  %v6786_v52 = vld [vmem:[%s9520_s1 + $0x564] ss:$16 sps:$4 sm:$0xff]  }
  0x70   :  { %1651 = vmatprep.subr.bf16.mxu0 %v6694_v53  ;;  %1815 = vmatprep.subr.bf16.mxu1 %v6697_v54  ;;  %v6789_v53 = vld [vmem:[%s9520_s1 + $0x56c] ss:$16 sps:$4 sm:$0xff]   ;;  %v6784_v54 = vld [vmem:[%s9520_s1 + $0x560] ss:$16 sps:$4 sm:$0xff]  }
  0x73   :  { %1652 = vmatpush1.bf16.msra.mxu0 %v6692_v55  ;;  %1816 = vmatpush1.bf16.msra.mxu1 %v6695_v56  ;;  %v6787_v55 = vld [vmem:[%s9520_s1 + $0x568] ss:$16 sps:$4 sm:$0xff]   ;;  %v6792_v56 = vld [vmem:[%s9520_s1 + $0x584] ss:$16 sps:$4 sm:$0xff]  }
  0x74   :  { %1653 = vmatprep.subr.bf16.mxu0 %v6700_v57  ;;  %1817 = vmatprep.subr.bf16.mxu1 %v6703_v58  ;;  %v6795_v57 = vld [vmem:[%s9520_s1 + $0x58c] ss:$16 sps:$4 sm:$0xff]   ;;  %v6790_v58 = vld [vmem:[%s9520_s1 + $0x580] ss:$16 sps:$4 sm:$0xff]  }
  0x77   :  { %1654 = vmatpush1.bf16.msra.mxu0 %v6698_v59  ;;  %1818 = vmatpush1.bf16.msra.mxu1 %v6701_v60  ;;  %v6793_v59 = vld [vmem:[%s9520_s1 + $0x588] ss:$16 sps:$4 sm:$0xff]   ;;  %v6798_v60 = vld [vmem:[%s9520_s1 + $0x5a4] ss:$16 sps:$4 sm:$0xff]  }
  0x78   :  { %1655 = vmatprep.subr.bf16.mxu0 %v6706_v61  ;;  %1819 = vmatprep.subr.bf16.mxu1 %v6709_v62  ;;  %v6801_v61 = vld [vmem:[%s9520_s1 + $0x5ac] ss:$16 sps:$4 sm:$0xff]   ;;  %v6796_v62 = vld [vmem:[%s9520_s1 + $0x5a0] ss:$16 sps:$4 sm:$0xff]  }
  0x7b   :  { %1656 = vmatpush1.bf16.msra.mxu0 %v6704_v63  ;;  %1820 = vmatpush1.bf16.msra.mxu1 %v6707_v0  ;;  %v6799_v63 = vld [vmem:[%s9520_s1 + $0x5a8] ss:$16 sps:$4 sm:$0xff]   ;;  %v6804_v0 = vld [vmem:[%s9520_s1 + $0x5c4] ss:$16 sps:$4 sm:$0xff]  }
  0x7c   :  { %1657 = vmatprep.subr.bf16.mxu0 %v6712_v1  ;;  %1821 = vmatprep.subr.bf16.mxu1 %v6715_v2  ;;  %v6807_v1 = vld [vmem:[%s9520_s1 + $0x5cc] ss:$16 sps:$4 sm:$0xff]   ;;  %v6802_v2 = vld [vmem:[%s9520_s1 + $0x5c0] ss:$16 sps:$4 sm:$0xff]  }
  0x7f   :  { %1658 = vmatpush1.bf16.msra.mxu0 %v6710_v3  ;;  %1822 = vmatpush1.bf16.msra.mxu1 %v6713_v4  ;;  %v6805_v3 = vld [vmem:[%s9520_s1 + $0x5c8] ss:$16 sps:$4 sm:$0xff]   ;;  %v6810_v4 = vld [vmem:[%s9520_s1 + $0x5e4] ss:$16 sps:$4 sm:$0xff]  }
  0x80   :  { %1668 = vmatprep.subr.bf16.mxu0 %v6720_v5  ;;  %1832 = vmatprep.subr.bf16.mxu1 %v6723_v6  ;;  %v6813_v5 = vld [vmem:[%s9520_s1 + $0x5ec] ss:$16 sps:$4 sm:$0xff]   ;;  %v6808_v6 = vld [vmem:[%s9520_s1 + $0x5e0] ss:$16 sps:$4 sm:$0xff]  }
  0x82   :  { %1660 = vmatmul.mubr.bf16.vlgmr.msra.gmra.mrb[0].mxu0 %v5307_v7  ;;  %1824 = vmatmul.mubr.bf16.vlgmr.msra.gmra.mrb[0].mxu1 %v5307_v7  ;;  %v6811_v7 = vld [vmem:[%s9520_s1 + $0x5e8] ss:$16 sps:$4 sm:$0xff]  }
  0x83   :  { %1669 = vmatpush1.bf16.msra.mxu0 %v6718_v8  ;;  %1833 = vmatpush1.bf16.msra.mxu1 %v6721_v9  ;;  %v6818_v8 = vld [vmem:[%s9520_s1 + $0x604] ss:$16 sps:$4 sm:$0xff]   ;;  %v6821_v9 = vld [vmem:[%s9520_s1 + $0x60c] ss:$16 sps:$4 sm:$0xff]  }
  0x84   :  { %1670 = vmatprep.subr.bf16.mxu0 %v6726_v10  ;;  %1834 = vmatprep.subr.bf16.mxu1 %v6729_v12  ;;  %v6816_v10 = vld [vmem:[%s9520_s1 + $0x600] ss:$16 sps:$4 sm:$0xff]   ;;  %v5309_v12 = vcombine.low %v7859_v11, %v7859_v11  ;;  %v6827_v11 = vld [vmem:[%s9520_s1 + $0x62c] ss:$16 sps:$4 sm:$0xff]  }
  0x85   :  { %1700 = vmatprep.mubr.bf16.mxu0 %v5310_v13  ;;  %1864 = vmatprep.mubr.bf16.mxu1 %v5310_v13  ;;  %v6819_v13 = vld [vmem:[%s9520_s1 + $0x608] ss:$16 sps:$4 sm:$0xff]  }
  0x87   :  { %1671 = vmatpush1.bf16.msra.mxu0 %v6724_v14  ;;  %1835 = vmatpush1.bf16.msra.mxu1 %v6727_v15  ;;  %v8057_v14 = vld [vmem:[%s9521_s0 + $0x18] sm:$0xff]  ;;  %v6824_v15 = vld [vmem:[%s9520_s1 + $0x624] ss:$16 sps:$4 sm:$0xff]  }
  0x88   :  { %1672 = vmatprep.subr.bf16.mxu0 %v6732_v16  ;;  %1836 = vmatprep.subr.bf16.mxu1 %v6735_v17  ;;  %v5312_v16 = vcombine.high %v8057_v14, %v8057_v14  ;;  %v6822_v17 = vld [vmem:[%s9520_s1 + $0x620] ss:$16 sps:$4 sm:$0xff]  }
  0x8b   :  { %1673 = vmatpush1.bf16.msra.mxu0 %v6730_v18  ;;  %1837 = vmatpush1.bf16.msra.mxu1 %v6733_v19  ;;  %v6825_v18 = vld [vmem:[%s9520_s1 + $0x628] ss:$16 sps:$4 sm:$0xff]   ;;  %v6830_v19 = vld [vmem:[%s9520_s1 + $0x644] ss:$16 sps:$4 sm:$0xff]  }
  0x8c   :  { %1674 = vmatprep.subr.bf16.mxu0 %v6738_v20  ;;  %1838 = vmatprep.subr.bf16.mxu1 %v6741_v21  ;;  %v6833_v20 = vld [vmem:[%s9520_s1 + $0x64c] ss:$16 sps:$4 sm:$0xff]   ;;  %v6828_v21 = vld [vmem:[%s9520_s1 + $0x640] ss:$16 sps:$4 sm:$0xff]  }
  0x8f   :  { %1675 = vmatpush1.bf16.msra.mxu0 %v6736_v22  ;;  %1839 = vmatpush1.bf16.msra.mxu1 %v6739_v23  ;;  %v6831_v22 = vld [vmem:[%s9520_s1 + $0x648] ss:$16 sps:$4 sm:$0xff]   ;;  %v6836_v23 = vld [vmem:[%s9520_s1 + $0x664] ss:$16 sps:$4 sm:$0xff]  }
  0x90   :  { %1676 = vmatprep.subr.bf16.mxu0 %v6744_v24  ;;  %1840 = vmatprep.subr.bf16.mxu1 %v6747_v25  ;;  %v6839_v24 = vld [vmem:[%s9520_s1 + $0x66c] ss:$16 sps:$4 sm:$0xff]   ;;  %v6834_v25 = vld [vmem:[%s9520_s1 + $0x660] ss:$16 sps:$4 sm:$0xff]  }
  0x93   :  { %1677 = vmatpush1.bf16.msra.mxu0 %v6742_v26  ;;  %1841 = vmatpush1.bf16.msra.mxu1 %v6745_v27  ;;  %v6837_v26 = vld [vmem:[%s9520_s1 + $0x668] ss:$16 sps:$4 sm:$0xff]   ;;  %v6842_v27 = vld [vmem:[%s9520_s1 + $0x684] ss:$16 sps:$4 sm:$0xff]  }
  0x94   :  { %1678 = vmatprep.subr.bf16.mxu0 %v6750_v28  ;;  %1842 = vmatprep.subr.bf16.mxu1 %v6753_v29  ;;  %v6845_v28 = vld [vmem:[%s9520_s1 + $0x68c] ss:$16 sps:$4 sm:$0xff]   ;;  %v6840_v29 = vld [vmem:[%s9520_s1 + $0x680] ss:$16 sps:$4 sm:$0xff]  }
  0x97   :  { %1679 = vmatpush1.bf16.msra.mxu0 %v6748_v30  ;;  %1843 = vmatpush1.bf16.msra.mxu1 %v6751_v31  ;;  %v6843_v30 = vld [vmem:[%s9520_s1 + $0x688] ss:$16 sps:$4 sm:$0xff]   ;;  %v6848_v31 = vld [vmem:[%s9520_s1 + $0x6a4] ss:$16 sps:$4 sm:$0xff]  }
  0x98   :  { %1680 = vmatprep.subr.bf16.mxu0 %v6756_v32  ;;  %1844 = vmatprep.subr.bf16.mxu1 %v6759_v33  ;;  %v6851_v32 = vld [vmem:[%s9520_s1 + $0x6ac] ss:$16 sps:$4 sm:$0xff]   ;;  %v6846_v33 = vld [vmem:[%s9520_s1 + $0x6a0] ss:$16 sps:$4 sm:$0xff]  }
  0x9b   :  { %1681 = vmatpush1.bf16.msra.mxu0 %v6754_v34  ;;  %1845 = vmatpush1.bf16.msra.mxu1 %v6757_v35  ;;  %v6849_v34 = vld [vmem:[%s9520_s1 + $0x6a8] ss:$16 sps:$4 sm:$0xff]   ;;  %v6854_v35 = vld [vmem:[%s9520_s1 + $0x6c4] ss:$16 sps:$4 sm:$0xff]  }
  0x9c   :  { %1682 = vmatprep.subr.bf16.mxu0 %v6762_v36  ;;  %1846 = vmatprep.subr.bf16.mxu1 %v6765_v37  ;;  %v6857_v36 = vld [vmem:[%s9520_s1 + $0x6cc] ss:$16 sps:$4 sm:$0xff]   ;;  %v6852_v37 = vld [vmem:[%s9520_s1 + $0x6c0] ss:$16 sps:$4 sm:$0xff]  }
  0x9f   :  { %1683 = vmatpush1.bf16.msra.mxu0 %v6760_v38  ;;  %1847 = vmatpush1.bf16.msra.mxu1 %v6763_v39  ;;  %v6855_v38 = vld [vmem:[%s9520_s1 + $0x6c8] ss:$16 sps:$4 sm:$0xff]   ;;  %v6860_v39 = vld [vmem:[%s9520_s1 + $0x6e4] ss:$16 sps:$4 sm:$0xff]  }
  0xa0   :  { %1684 = vmatprep.subr.bf16.mxu0 %v6768_v40  ;;  %1848 = vmatprep.subr.bf16.mxu1 %v6771_v41  ;;  %v6863_v40 = vld [vmem:[%s9520_s1 + $0x6ec] ss:$16 sps:$4 sm:$0xff]   ;;  %v6858_v41 = vld [vmem:[%s9520_s1 + $0x6e0] ss:$16 sps:$4 sm:$0xff]  }
  0xa3   :  { %1685 = vmatpush1.bf16.msra.mxu0 %v6766_v42  ;;  %1849 = vmatpush1.bf16.msra.mxu1 %v6769_v43  ;;  %v6861_v42 = vld [vmem:[%s9520_s1 + $0x6e8] ss:$16 sps:$4 sm:$0xff]   ;;  %v6866_v43 = vld [vmem:[%s9520_s1 + $0x704] ss:$16 sps:$4 sm:$0xff]  }
  0xa4   :  { %1686 = vmatprep.subr.bf16.mxu0 %v6774_v44  ;;  %1850 = vmatprep.subr.bf16.mxu1 %v6777_v45  ;;  %v6869_v44 = vld [vmem:[%s9520_s1 + $0x70c] ss:$16 sps:$4 sm:$0xff]   ;;  %v6864_v45 = vld [vmem:[%s9520_s1 + $0x700] ss:$16 sps:$4 sm:$0xff]  }
  0xa7   :  { %1687 = vmatpush1.bf16.msra.mxu0 %v6772_v46  ;;  %1851 = vmatpush1.bf16.msra.mxu1 %v6775_v47  ;;  %v6867_v46 = vld [vmem:[%s9520_s1 + $0x708] ss:$16 sps:$4 sm:$0xff]   ;;  %v6872_v47 = vld [vmem:[%s9520_s1 + $0x724] ss:$16 sps:$4 sm:$0xff]  }
  0xa8   :  { %1688 = vmatprep.subr.bf16.mxu0 %v6780_v48  ;;  %1852 = vmatprep.subr.bf16.mxu1 %v6783_v49  ;;  %v6875_v48 = vld [vmem:[%s9520_s1 + $0x72c] ss:$16 sps:$4 sm:$0xff]   ;;  %v6870_v49 = vld [vmem:[%s9520_s1 + $0x720] ss:$16 sps:$4 sm:$0xff]  }
  0xab   :  { %1689 = vmatpush1.bf16.msra.mxu0 %v6778_v50  ;;  %1853 = vmatpush1.bf16.msra.mxu1 %v6781_v51  ;;  %v6873_v50 = vld [vmem:[%s9520_s1 + $0x728] ss:$16 sps:$4 sm:$0xff]   ;;  %v6878_v51 = vld [vmem:[%s9520_s1 + $0x744] ss:$16 sps:$4 sm:$0xff]  }
  0xac   :  { %1690 = vmatprep.subr.bf16.mxu0 %v6786_v52  ;;  %1854 = vmatprep.subr.bf16.mxu1 %v6789_v53  ;;  %v6881_v52 = vld [vmem:[%s9520_s1 + $0x74c] ss:$16 sps:$4 sm:$0xff]   ;;  %v6876_v53 = vld [vmem:[%s9520_s1 + $0x740] ss:$16 sps:$4 sm:$0xff]  }
  0xaf   :  { %1691 = vmatpush1.bf16.msra.mxu0 %v6784_v54  ;;  %1855 = vmatpush1.bf16.msra.mxu1 %v6787_v55  ;;  %v6879_v54 = vld [vmem:[%s9520_s1 + $0x748] ss:$16 sps:$4 sm:$0xff]   ;;  %v6884_v55 = vld [vmem:[%s9520_s1 + $0x764] ss:$16 sps:$4 sm:$0xff]  }
  0xb0   :  { %1692 = vmatprep.subr.bf16.mxu0 %v6792_v56  ;;  %1856 = vmatprep.subr.bf16.mxu1 %v6795_v57  ;;  %v6887_v56 = vld [vmem:[%s9520_s1 + $0x76c] ss:$16 sps:$4 sm:$0xff]   ;;  %v6882_v57 = vld [vmem:[%s9520_s1 + $0x760] ss:$16 sps:$4 sm:$0xff]  }
  0xb3   :  { %1693 = vmatpush1.bf16.msra.mxu0 %v6790_v58  ;;  %1857 = vmatpush1.bf16.msra.mxu1 %v6793_v59  ;;  %v6885_v58 = vld [vmem:[%s9520_s1 + $0x768] ss:$16 sps:$4 sm:$0xff]   ;;  %v6890_v59 = vld [vmem:[%s9520_s1 + $0x784] ss:$16 sps:$4 sm:$0xff]  }
  0xb4   :  { %1694 = vmatprep.subr.bf16.mxu0 %v6798_v60  ;;  %1858 = vmatprep.subr.bf16.mxu1 %v6801_v61  ;;  %v6893_v60 = vld [vmem:[%s9520_s1 + $0x78c] ss:$16 sps:$4 sm:$0xff]   ;;  %v6888_v61 = vld [vmem:[%s9520_s1 + $0x780] ss:$16 sps:$4 sm:$0xff]  }
  0xb7   :  { %1695 = vmatpush1.bf16.msra.mxu0 %v6796_v62  ;;  %1859 = vmatpush1.bf16.msra.mxu1 %v6799_v63  ;;  %v6891_v62 = vld [vmem:[%s9520_s1 + $0x788] ss:$16 sps:$4 sm:$0xff]   ;;  %v6896_v63 = vld [vmem:[%s9520_s1 + $0x7a4] ss:$16 sps:$4 sm:$0xff]  }
  0xb8   :  { %1696 = vmatprep.subr.bf16.mxu0 %v6804_v0  ;;  %1860 = vmatprep.subr.bf16.mxu1 %v6807_v1  ;;  %v6899_v0 = vld [vmem:[%s9520_s1 + $0x7ac] ss:$16 sps:$4 sm:$0xff]   ;;  %v6894_v1 = vld [vmem:[%s9520_s1 + $0x7a0] ss:$16 sps:$4 sm:$0xff]  }
  0xbb   :  { %1697 = vmatpush1.bf16.msra.mxu0 %v6802_v2  ;;  %1861 = vmatpush1.bf16.msra.mxu1 %v6805_v3  ;;  %v6897_v2 = vld [vmem:[%s9520_s1 + $0x7a8] ss:$16 sps:$4 sm:$0xff]   ;;  %v6902_v3 = vld [vmem:[%s9520_s1 + $0x7c4] ss:$16 sps:$4 sm:$0xff]  }
  0xbc   :  { %1698 = vmatprep.subr.bf16.mxu0 %v6810_v4  ;;  %1862 = vmatprep.subr.bf16.mxu1 %v6813_v5  ;;  %v6905_v4 = vld [vmem:[%s9520_s1 + $0x7cc] ss:$16 sps:$4 sm:$0xff]   ;;  %v6900_v5 = vld [vmem:[%s9520_s1 + $0x7c0] ss:$16 sps:$4 sm:$0xff]  }
  0xbf   :  { %1699 = vmatpush1.bf16.msra.mxu0 %v6808_v6  ;;  %1863 = vmatpush1.bf16.msra.mxu1 %v6811_v7  ;;  %v6903_v6 = vld [vmem:[%s9520_s1 + $0x7c8] ss:$16 sps:$4 sm:$0xff]   ;;  %v6908_v7 = vld [vmem:[%s9520_s1 + $0x7e4] ss:$16 sps:$4 sm:$0xff]  }
  0xc0   :  { %1709 = vmatprep.subr.bf16.mxu0 %v6818_v8  ;;  %1873 = vmatprep.subr.bf16.mxu1 %v6821_v9  ;;  %v6911_v8 = vld [vmem:[%s9520_s1 + $0x7ec] ss:$16 sps:$4 sm:$0xff]   ;;  %v6906_v9 = vld [vmem:[%s9520_s1 + $0x7e0] ss:$16 sps:$4 sm:$0xff]  }
  0xc2   :  { %1701 = vmatmul.mubr.bf16.vlgmr.msra.gmra.mrb[0].mxu0 %v5309_v12  ;;  %1865 = vmatmul.mubr.bf16.vlgmr.msra.gmra.mrb[0].mxu1 %v5309_v12  ;;  %v6916_v12 = vld [vmem:[%s9522_s2 + $0x4] ss:$36 sps:$4 sm:$0xff]  }
  0xc3   :  { %1710 = vmatpush1.bf16.msra.mxu0 %v6816_v10  ;;  %1874 = vmatpush1.bf16.msra.mxu1 %v6819_v13  ;;  %v6909_v10 = vld [vmem:[%s9520_s1 + $0x7e8] ss:$16 sps:$4 sm:$0xff]   ;;  %v6919_v13 = vld [vmem:[%s9522_s2 + $0xc] ss:$36 sps:$4 sm:$0xff]  }
  0xc4   :  { %1711 = vmatprep.subr.bf16.mxu0 %v6824_v15  ;;  %1875 = vmatprep.subr.bf16.mxu1 %v6827_v11  ;;  %v6914_v15 = vld [vmem:[%s9522_s2] ss:$36 sps:$4 sm:$0xff]   ;;  %v6917_v11 = vld [vmem:[%s9522_s2 + $0x8] ss:$36 sps:$4 sm:$0xff]  }
  0xc5   :  { %1741 = vmatprep.mubr.bf16.mxu0 %v5312_v16  ;;  %1905 = vmatprep.mubr.bf16.mxu1 %v5312_v16  ;;  %v5311_v16 = vcombine.low %v8057_v14, %v8057_v14  ;;  %v6923_v14 = vld [vmem:[%s9522_s2 + $0x50] ss:$36 sps:$4 sm:$0xff]  }
  0xc7   :  { %1712 = vmatpush1.bf16.msra.mxu0 %v6822_v17  ;;  %1876 = vmatpush1.bf16.msra.mxu1 %v6825_v18  ;;  %v6922_v17 = vld [vmem:[%s9522_s2 + $0x4c] ss:$36 sps:$4 sm:$0xff]   ;;  %v6925_v18 = vld [vmem:[%s9522_s2 + $0x54] ss:$36 sps:$4 sm:$0xff]  }
  0xc8   :  { %1713 = vmatprep.subr.bf16.mxu0 %v6830_v19  ;;  %1877 = vmatprep.subr.bf16.mxu1 %v6833_v20  ;;  %v6920_v19 = vld [vmem:[%s9522_s2 + $0x48] ss:$36 sps:$4 sm:$0xff]   ;;  %v6928_v20 = vld [vmem:[%s9522_s2 + $0x94] ss:$36 sps:$4 sm:$0xff]  }
  0xcb   :  { %1714 = vmatpush1.bf16.msra.mxu0 %v6828_v21  ;;  %1878 = vmatpush1.bf16.msra.mxu1 %v6831_v22  ;;  %v6931_v21 = vld [vmem:[%s9522_s2 + $0x9c] ss:$36 sps:$4 sm:$0xff]   ;;  %v6926_v22 = vld [vmem:[%s9522_s2 + $0x90] ss:$36 sps:$4 sm:$0xff]  }
  0xcc   :  { %1715 = vmatprep.subr.bf16.mxu0 %v6836_v23  ;;  %1879 = vmatprep.subr.bf16.mxu1 %v6839_v24  ;;  %v6929_v23 = vld [vmem:[%s9522_s2 + $0x98] ss:$36 sps:$4 sm:$0xff]  }
  0xcd   :  { %v6934_v24 = vld [vmem:[%s9522_s2 + $0xdc] ss:$36 sps:$4 sm:$0xff]  }
  0xcf   :  { %1716 = vmatpush1.bf16.msra.mxu0 %v6834_v25  ;;  %1880 = vmatpush1.bf16.msra.mxu1 %v6837_v26  ;;  %v6937_v25 = vld [vmem:[%s9522_s2 + $0xe4] ss:$36 sps:$4 sm:$0xff]   ;;  %v6932_v26 = vld [vmem:[%s9522_s2 + $0xd8] ss:$36 sps:$4 sm:$0xff]  }
  0xd0   :  { %1717 = vmatprep.subr.bf16.mxu0 %v6842_v27  ;;  %1881 = vmatprep.subr.bf16.mxu1 %v6845_v28  ;;  %v6935_v27 = vld [vmem:[%s9522_s2 + $0xe0] ss:$36 sps:$4 sm:$0xff]  }
  0xd1   :  { %v6940_v28 = vld [vmem:[%s9522_s2 + $0x124] ss:$36 sps:$4 sm:$0xff]  }
  0xd3   :  { %1718 = vmatpush1.bf16.msra.mxu0 %v6840_v29  ;;  %1882 = vmatpush1.bf16.msra.mxu1 %v6843_v30  ;;  %v6943_v29 = vld [vmem:[%s9522_s2 + $0x12c] ss:$36 sps:$4 sm:$0xff]   ;;  %v6938_v30 = vld [vmem:[%s9522_s2 + $0x120] ss:$36 sps:$4 sm:$0xff]  }
  0xd4   :  { %1719 = vmatprep.subr.bf16.mxu0 %v6848_v31  ;;  %1883 = vmatprep.subr.bf16.mxu1 %v6851_v32  ;;  %v6941_v31 = vld [vmem:[%s9522_s2 + $0x128] ss:$36 sps:$4 sm:$0xff]  }
  0xd5   :  { %v6946_v32 = vld [vmem:[%s9522_s2 + $0x16c] ss:$36 sps:$4 sm:$0xff]  }
  0xd7   :  { %1720 = vmatpush1.bf16.msra.mxu0 %v6846_v33  ;;  %1884 = vmatpush1.bf16.msra.mxu1 %v6849_v34  ;;  %v6949_v33 = vld [vmem:[%s9522_s2 + $0x174] ss:$36 sps:$4 sm:$0xff]   ;;  %v6944_v34 = vld [vmem:[%s9522_s2 + $0x168] ss:$36 sps:$4 sm:$0xff]  }
  0xd8   :  { %1721 = vmatprep.subr.bf16.mxu0 %v6854_v35  ;;  %1885 = vmatprep.subr.bf16.mxu1 %v6857_v36  ;;  %v6947_v35 = vld [vmem:[%s9522_s2 + $0x170] ss:$36 sps:$4 sm:$0xff]  }
  0xd9   :  { %v6952_v36 = vld [vmem:[%s9522_s2 + $0x1b4] ss:$36 sps:$4 sm:$0xff]  }
  0xdb   :  { %1722 = vmatpush1.bf16.msra.mxu0 %v6852_v37  ;;  %1886 = vmatpush1.bf16.msra.mxu1 %v6855_v38  ;;  %v6955_v37 = vld [vmem:[%s9522_s2 + $0x1bc] ss:$36 sps:$4 sm:$0xff]   ;;  %v6950_v38 = vld [vmem:[%s9522_s2 + $0x1b0] ss:$36 sps:$4 sm:$0xff]  }
  0xdc   :  { %1723 = vmatprep.subr.bf16.mxu0 %v6860_v39  ;;  %1887 = vmatprep.subr.bf16.mxu1 %v6863_v40  ;;  %v6953_v39 = vld [vmem:[%s9522_s2 + $0x1b8] ss:$36 sps:$4 sm:$0xff]  }
  0xdd   :  { %v6958_v40 = vld [vmem:[%s9522_s2 + $0x1fc] ss:$36 sps:$4 sm:$0xff]  }
  0xdf   :  { %1724 = vmatpush1.bf16.msra.mxu0 %v6858_v41  ;;  %1888 = vmatpush1.bf16.msra.mxu1 %v6861_v42  ;;  %v6961_v41 = vld [vmem:[%s9522_s2 + $0x204] ss:$36 sps:$4 sm:$0xff]   ;;  %v6956_v42 = vld [vmem:[%s9522_s2 + $0x1f8] ss:$36 sps:$4 sm:$0xff]  }
  0xe0   :  { %1725 = vmatprep.subr.bf16.mxu0 %v6866_v43  ;;  %1889 = vmatprep.subr.bf16.mxu1 %v6869_v44  ;;  %v6959_v43 = vld [vmem:[%s9522_s2 + $0x200] ss:$36 sps:$4 sm:$0xff]  }
  0xe1   :  { %v6964_v44 = vld [vmem:[%s9522_s2 + $0x244] ss:$36 sps:$4 sm:$0xff]  }
  0xe3   :  { %1726 = vmatpush1.bf16.msra.mxu0 %v6864_v45  ;;  %1890 = vmatpush1.bf16.msra.mxu1 %v6867_v46  ;;  %v6967_v45 = vld [vmem:[%s9522_s2 + $0x24c] ss:$36 sps:$4 sm:$0xff]   ;;  %v6962_v46 = vld [vmem:[%s9522_s2 + $0x240] ss:$36 sps:$4 sm:$0xff]  }
  0xe4   :  { %1727 = vmatprep.subr.bf16.mxu0 %v6872_v47  ;;  %1891 = vmatprep.subr.bf16.mxu1 %v6875_v48  ;;  %v6965_v47 = vld [vmem:[%s9522_s2 + $0x248] ss:$36 sps:$4 sm:$0xff]  }
  0xe5   :  { %v6970_v48 = vld [vmem:[%s9522_s2 + $0x28c] ss:$36 sps:$4 sm:$0xff]  }
  0xe7   :  { %1728 = vmatpush1.bf16.msra.mxu0 %v6870_v49  ;;  %1892 = vmatpush1.bf16.msra.mxu1 %v6873_v50  ;;  %v6973_v49 = vld [vmem:[%s9522_s2 + $0x294] ss:$36 sps:$4 sm:$0xff]   ;;  %v6968_v50 = vld [vmem:[%s9522_s2 + $0x288] ss:$36 sps:$4 sm:$0xff]  }
  0xe8   :  { %1729 = vmatprep.subr.bf16.mxu0 %v6878_v51  ;;  %1893 = vmatprep.subr.bf16.mxu1 %v6881_v52  ;;  %v6971_v51 = vld [vmem:[%s9522_s2 + $0x290] ss:$36 sps:$4 sm:$0xff]  }
  0xe9   :  { %v6976_v52 = vld [vmem:[%s9522_s2 + $0x2d4] ss:$36 sps:$4 sm:$0xff]  }
  0xeb   :  { %1730 = vmatpush1.bf16.msra.mxu0 %v6876_v53  ;;  %1894 = vmatpush1.bf16.msra.mxu1 %v6879_v54  ;;  %v6979_v53 = vld [vmem:[%s9522_s2 + $0x2dc] ss:$36 sps:$4 sm:$0xff]   ;;  %v6974_v54 = vld [vmem:[%s9522_s2 + $0x2d0] ss:$36 sps:$4 sm:$0xff]  }
  0xec   :  { %1731 = vmatprep.subr.bf16.mxu0 %v6884_v55  ;;  %1895 = vmatprep.subr.bf16.mxu1 %v6887_v56  ;;  %v6977_v55 = vld [vmem:[%s9522_s2 + $0x2d8] ss:$36 sps:$4 sm:$0xff]  }
  0xed   :  { %v6982_v56 = vld [vmem:[%s9522_s2 + $0x31c] ss:$36 sps:$4 sm:$0xff]  }
  0xef   :  { %1732 = vmatpush1.bf16.msra.mxu0 %v6882_v57  ;;  %1896 = vmatpush1.bf16.msra.mxu1 %v6885_v58  ;;  %v6985_v57 = vld [vmem:[%s9522_s2 + $0x324] ss:$36 sps:$4 sm:$0xff]   ;;  %v6980_v58 = vld [vmem:[%s9522_s2 + $0x318] ss:$36 sps:$4 sm:$0xff]  }
  0xf0   :  { %1733 = vmatprep.subr.bf16.mxu0 %v6890_v59  ;;  %1897 = vmatprep.subr.bf16.mxu1 %v6893_v60  ;;  %v6983_v59 = vld [vmem:[%s9522_s2 + $0x320] ss:$36 sps:$4 sm:$0xff]  }
  0xf1   :  { %v6988_v60 = vld [vmem:[%s9522_s2 + $0x364] ss:$36 sps:$4 sm:$0xff]  }
  0xf3   :  { %1734 = vmatpush1.bf16.msra.mxu0 %v6888_v61  ;;  %1898 = vmatpush1.bf16.msra.mxu1 %v6891_v62  ;;  %v6991_v61 = vld [vmem:[%s9522_s2 + $0x36c] ss:$36 sps:$4 sm:$0xff]   ;;  %v6986_v62 = vld [vmem:[%s9522_s2 + $0x360] ss:$36 sps:$4 sm:$0xff]  }
  0xf4   :  { %1735 = vmatprep.subr.bf16.mxu0 %v6896_v63  ;;  %1899 = vmatprep.subr.bf16.mxu1 %v6899_v0  ;;  %v6989_v63 = vld [vmem:[%s9522_s2 + $0x368] ss:$36 sps:$4 sm:$0xff]  }
  0xf5   :  { %v6994_v0 = vld [vmem:[%s9522_s2 + $0x3ac] ss:$36 sps:$4 sm:$0xff]  }
  0xf7   :  { %1736 = vmatpush1.bf16.msra.mxu0 %v6894_v1  ;;  %1900 = vmatpush1.bf16.msra.mxu1 %v6897_v2  ;;  %v6997_v1 = vld [vmem:[%s9522_s2 + $0x3b4] ss:$36 sps:$4 sm:$0xff]   ;;  %v6992_v2 = vld [vmem:[%s9522_s2 + $0x3a8] ss:$36 sps:$4 sm:$0xff]  }
  0xf8   :  { %1737 = vmatprep.subr.bf16.mxu0 %v6902_v3  ;;  %1901 = vmatprep.subr.bf16.mxu1 %v6905_v4  ;;  %v6995_v3 = vld [vmem:[%s9522_s2 + $0x3b0] ss:$36 sps:$4 sm:$0xff]  }
  0xf9   :  { %v7000_v4 = vld [vmem:[%s9522_s2 + $0x3f4] ss:$36 sps:$4 sm:$0xff]  }
  0xfb   :  { %1738 = vmatpush1.bf16.msra.mxu0 %v6900_v5  ;;  %1902 = vmatpush1.bf16.msra.mxu1 %v6903_v6  ;;  %v7003_v5 = vld [vmem:[%s9522_s2 + $0x3fc] ss:$36 sps:$4 sm:$0xff]   ;;  %v6998_v6 = vld [vmem:[%s9522_s2 + $0x3f0] ss:$36 sps:$4 sm:$0xff]  }
  0xfc   :  { %1739 = vmatprep.subr.bf16.mxu0 %v6908_v7  ;;  %1903 = vmatprep.subr.bf16.mxu1 %v6911_v8  ;;  %v7001_v7 = vld [vmem:[%s9522_s2 + $0x3f8] ss:$36 sps:$4 sm:$0xff]  }
  0xfd   :  { %v7006_v8 = vld [vmem:[%s9522_s2 + $0x43c] ss:$36 sps:$4 sm:$0xff]  }
  0xff   :  { %1740 = vmatpush1.bf16.msra.mxu0 %v6906_v9  ;;  %1904 = vmatpush1.bf16.msra.mxu1 %v6909_v10  ;;  %v7009_v9 = vld [vmem:[%s9522_s2 + $0x444] ss:$36 sps:$4 sm:$0xff]   ;;  %v7004_v10 = vld [vmem:[%s9522_s2 + $0x438] ss:$36 sps:$4 sm:$0xff]  }
 0x100   :  { %3714 = vmatprep.subr.bf16.mxu0 %v6916_v12  ;;  %3796 = vmatprep.subr.bf16.mxu1 %v6919_v13  ;;  %v7007_v12 = vld [vmem:[%s9522_s2 + $0x440] ss:$36 sps:$4 sm:$0xff]  }
 0x101   :  { %v7012_v13 = vld [vmem:[%s9522_s2 + $0x484] ss:$36 sps:$4 sm:$0xff]  }
 0x102   :  { %1742 = vmatmul.mubr.bf16.vlgmr.msra.gmra.mrb[0].mxu0 %v5311_v16  ;;  %1906 = vmatmul.mubr.bf16.vlgmr.msra.gmra.mrb[0].mxu1 %v5311_v16 }
 0x103   :  { %3715 = vmatpush1.bf16.msra.mxu0 %v6914_v15  ;;  %3797 = vmatpush1.bf16.msra.mxu1 %v6917_v11  ;;  %v7015_v15 = vld [vmem:[%s9522_s2 + $0x48c] ss:$36 sps:$4 sm:$0xff]  }
 0x104   :  { %3716 = vmatprep.subr.bf16.mxu0 %v6922_v17  ;;  %3798 = vmatprep.subr.bf16.mxu1 %v6925_v18 }
 0x107   :  { %3717 = vmatpush1.bf16.msra.mxu0 %v6920_v19  ;;  %3799 = vmatpush1.bf16.msra.mxu1 %v6923_v14 }
 0x108   :  { %3718 = vmatprep.subr.bf16.mxu0 %v6928_v20  ;;  %3800 = vmatprep.subr.bf16.mxu1 %v6931_v21 }
 0x10b   :  { %3719 = vmatpush1.bf16.msra.mxu0 %v6926_v22  ;;  %3801 = vmatpush1.bf16.msra.mxu1 %v6929_v23 }
 0x10c   :  { %3720 = vmatprep.subr.bf16.mxu0 %v6934_v24  ;;  %3802 = vmatprep.subr.bf16.mxu1 %v6937_v25 }
 0x10f   :  { %3721 = vmatpush1.bf16.msra.mxu0 %v6932_v26  ;;  %3803 = vmatpush1.bf16.msra.mxu1 %v6935_v27  ;;  %v7010_v26 = vld [vmem:[%s9522_s2 + $0x480] ss:$36 sps:$4 sm:$0xff]   ;;  %v7013_v27 = vld [vmem:[%s9522_s2 + $0x488] ss:$36 sps:$4 sm:$0xff]  }
 0x110   :  { %3722 = vmatprep.subr.bf16.mxu0 %v6940_v28  ;;  %3804 = vmatprep.subr.bf16.mxu1 %v6943_v29  ;;  %v7018_v29 = vld [vmem:[%s9522_s2 + $0x4cc] ss:$36 sps:$4 sm:$0xff]  }
 0x113   :  { %3723 = vmatpush1.bf16.msra.mxu0 %v6938_v30  ;;  %3805 = vmatpush1.bf16.msra.mxu1 %v6941_v31  ;;  %v7021_v30 = vld [vmem:[%s9522_s2 + $0x4d4] ss:$36 sps:$4 sm:$0xff]  }
 0x114   :  { %3724 = vmatprep.subr.bf16.mxu0 %v6946_v32  ;;  %3806 = vmatprep.subr.bf16.mxu1 %v6949_v33  ;;  %v7016_v32 = vld [vmem:[%s9522_s2 + $0x4c8] ss:$36 sps:$4 sm:$0xff]   ;;  %v7019_v33 = vld [vmem:[%s9522_s2 + $0x4d0] ss:$36 sps:$4 sm:$0xff]  }
 0x117   :  { %3725 = vmatpush1.bf16.msra.mxu0 %v6944_v34  ;;  %3807 = vmatpush1.bf16.msra.mxu1 %v6947_v35  ;;  %v7024_v34 = vld [vmem:[%s9522_s2 + $0x514] ss:$36 sps:$4 sm:$0xff]   ;;  %v7027_v35 = vld [vmem:[%s9522_s2 + $0x51c] ss:$36 sps:$4 sm:$0xff]  }
 0x118   :  { %3726 = vmatprep.subr.bf16.mxu0 %v6952_v36  ;;  %3808 = vmatprep.subr.bf16.mxu1 %v6955_v37  ;;  %v7022_v36 = vld [vmem:[%s9522_s2 + $0x510] ss:$36 sps:$4 sm:$0xff]   ;;  %v7025_v37 = vld [vmem:[%s9522_s2 + $0x518] ss:$36 sps:$4 sm:$0xff]  }
 0x11b   :  { %3727 = vmatpush1.bf16.msra.mxu0 %v6950_v38  ;;  %3809 = vmatpush1.bf16.msra.mxu1 %v6953_v39  ;;  %v7030_v38 = vld [vmem:[%s9522_s2 + $0x55c] ss:$36 sps:$4 sm:$0xff]   ;;  %v7033_v39 = vld [vmem:[%s9522_s2 + $0x564] ss:$36 sps:$4 sm:$0xff]  }
 0x11c   :  { %3728 = vmatprep.subr.bf16.mxu0 %v6958_v40  ;;  %3810 = vmatprep.subr.bf16.mxu1 %v6961_v41  ;;  %v7028_v40 = vld [vmem:[%s9522_s2 + $0x558] ss:$36 sps:$4 sm:$0xff]   ;;  %v7031_v41 = vld [vmem:[%s9522_s2 + $0x560] ss:$36 sps:$4 sm:$0xff]  }
 0x11f   :  { %3729 = vmatpush1.bf16.msra.mxu0 %v6956_v42  ;;  %3811 = vmatpush1.bf16.msra.mxu1 %v6959_v43  ;;  %v7036_v42 = vld [vmem:[%s9522_s2 + $0x5a4] ss:$36 sps:$4 sm:$0xff]   ;;  %v7039_v43 = vld [vmem:[%s9522_s2 + $0x5ac] ss:$36 sps:$4 sm:$0xff]  }
 0x120   :  { %3730 = vmatprep.subr.bf16.mxu0 %v6964_v44  ;;  %3812 = vmatprep.subr.bf16.mxu1 %v6967_v45  ;;  %v7034_v44 = vld [vmem:[%s9522_s2 + $0x5a0] ss:$36 sps:$4 sm:$0xff]   ;;  %v7037_v45 = vld [vmem:[%s9522_s2 + $0x5a8] ss:$36 sps:$4 sm:$0xff]  }
 0x123   :  { %3731 = vmatpush1.bf16.msra.mxu0 %v6962_v46  ;;  %3813 = vmatpush1.bf16.msra.mxu1 %v6965_v47  ;;  %v7042_v46 = vld [vmem:[%s9522_s2 + $0x5ec] ss:$36 sps:$4 sm:$0xff]   ;;  %v7045_v47 = vld [vmem:[%s9522_s2 + $0x5f4] ss:$36 sps:$4 sm:$0xff]  }
 0x124   :  { %3732 = vmatprep.subr.bf16.mxu0 %v6970_v48  ;;  %3814 = vmatprep.subr.bf16.mxu1 %v6973_v49  ;;  %v7040_v48 = vld [vmem:[%s9522_s2 + $0x5e8] ss:$36 sps:$4 sm:$0xff]   ;;  %v7043_v49 = vld [vmem:[%s9522_s2 + $0x5f0] ss:$36 sps:$4 sm:$0xff]  }
 0x127   :  { %3733 = vmatpush1.bf16.msra.mxu0 %v6968_v50  ;;  %3815 = vmatpush1.bf16.msra.mxu1 %v6971_v51  ;;  %v7048_v50 = vld [vmem:[%s9522_s2 + $0x634] ss:$36 sps:$4 sm:$0xff]   ;;  %v7051_v51 = vld [vmem:[%s9522_s2 + $0x63c] ss:$36 sps:$4 sm:$0xff]  }
 0x128   :  { %3734 = vmatprep.subr.bf16.mxu0 %v6976_v52  ;;  %3816 = vmatprep.subr.bf16.mxu1 %v6979_v53  ;;  %v7046_v52 = vld [vmem:[%s9522_s2 + $0x630] ss:$36 sps:$4 sm:$0xff]   ;;  %v7049_v53 = vld [vmem:[%s9522_s2 + $0x638] ss:$36 sps:$4 sm:$0xff]  }
 0x12b   :  { %3735 = vmatpush1.bf16.msra.mxu0 %v6974_v54  ;;  %3817 = vmatpush1.bf16.msra.mxu1 %v6977_v55  ;;  %v7054_v54 = vld [vmem:[%s9522_s2 + $0x67c] ss:$36 sps:$4 sm:$0xff]   ;;  %v7057_v55 = vld [vmem:[%s9522_s2 + $0x684] ss:$36 sps:$4 sm:$0xff]  }
 0x12c   :  { %3736 = vmatprep.subr.bf16.mxu0 %v6982_v56  ;;  %3818 = vmatprep.subr.bf16.mxu1 %v6985_v57  ;;  %v7052_v56 = vld [vmem:[%s9522_s2 + $0x678] ss:$36 sps:$4 sm:$0xff]   ;;  %v7055_v57 = vld [vmem:[%s9522_s2 + $0x680] ss:$36 sps:$4 sm:$0xff]  }
 0x12f   :  { %3737 = vmatpush1.bf16.msra.mxu0 %v6980_v58  ;;  %3819 = vmatpush1.bf16.msra.mxu1 %v6983_v59  ;;  %v7060_v58 = vld [vmem:[%s9522_s2 + $0x6c4] ss:$36 sps:$4 sm:$0xff]   ;;  %v7063_v59 = vld [vmem:[%s9522_s2 + $0x6cc] ss:$36 sps:$4 sm:$0xff]  }
 0x130   :  { %3738 = vmatprep.subr.bf16.mxu0 %v6988_v60  ;;  %3820 = vmatprep.subr.bf16.mxu1 %v6991_v61  ;;  %v7058_v60 = vld [vmem:[%s9522_s2 + $0x6c0] ss:$36 sps:$4 sm:$0xff]   ;;  %v7061_v61 = vld [vmem:[%s9522_s2 + $0x6c8] ss:$36 sps:$4 sm:$0xff]  }
 0x133   :  { %3739 = vmatpush1.bf16.msra.mxu0 %v6986_v62  ;;  %3821 = vmatpush1.bf16.msra.mxu1 %v6989_v63  ;;  %v7066_v62 = vld [vmem:[%s9522_s2 + $0x70c] ss:$36 sps:$4 sm:$0xff]   ;;  %v7069_v63 = vld [vmem:[%s9522_s2 + $0x714] ss:$36 sps:$4 sm:$0xff]  }
 0x134   :  { %3740 = vmatprep.subr.bf16.mxu0 %v6994_v0  ;;  %3822 = vmatprep.subr.bf16.mxu1 %v6997_v1  ;;  %v7064_v0 = vld [vmem:[%s9522_s2 + $0x708] ss:$36 sps:$4 sm:$0xff]   ;;  %v7067_v1 = vld [vmem:[%s9522_s2 + $0x710] ss:$36 sps:$4 sm:$0xff]  }
 0x137   :  { %3741 = vmatpush1.bf16.msra.mxu0 %v6992_v2  ;;  %3823 = vmatpush1.bf16.msra.mxu1 %v6995_v3  ;;  %v7072_v2 = vld [vmem:[%s9522_s2 + $0x754] ss:$36 sps:$4 sm:$0xff]   ;;  %v7075_v3 = vld [vmem:[%s9522_s2 + $0x75c] ss:$36 sps:$4 sm:$0xff]  }
 0x138   :  { %3742 = vmatprep.subr.bf16.mxu0 %v7000_v4  ;;  %3824 = vmatprep.subr.bf16.mxu1 %v7003_v5  ;;  %v7070_v4 = vld [vmem:[%s9522_s2 + $0x750] ss:$36 sps:$4 sm:$0xff]   ;;  %v7073_v5 = vld [vmem:[%s9522_s2 + $0x758] ss:$36 sps:$4 sm:$0xff]  }
 0x13b   :  { %3743 = vmatpush1.bf16.msra.mxu0 %v6998_v6  ;;  %3825 = vmatpush1.bf16.msra.mxu1 %v7001_v7  ;;  %v7078_v6 = vld [vmem:[%s9522_s2 + $0x79c] ss:$36 sps:$4 sm:$0xff]   ;;  %v7081_v7 = vld [vmem:[%s9522_s2 + $0x7a4] ss:$36 sps:$4 sm:$0xff]  }
 0x13c   :  { %3744 = vmatprep.subr.bf16.mxu0 %v7006_v8  ;;  %3826 = vmatprep.subr.bf16.mxu1 %v7009_v9  ;;  %v7076_v8 = vld [vmem:[%s9522_s2 + $0x798] ss:$36 sps:$4 sm:$0xff]   ;;  %v7079_v9 = vld [vmem:[%s9522_s2 + $0x7a0] ss:$36 sps:$4 sm:$0xff]  }
 0x13f   :  { %3745 = vmatpush1.bf16.msra.mxu0 %v7004_v10  ;;  %3827 = vmatpush1.bf16.msra.mxu1 %v7007_v12  ;;  %v7084_v10 = vld [vmem:[%s9522_s2 + $0x7e4] ss:$36 sps:$4 sm:$0xff]   ;;  %v7087_v12 = vld [vmem:[%s9522_s2 + $0x7ec] ss:$36 sps:$4 sm:$0xff]  }
 0x140   :  { %3755 = vmatprep.subr.bf16.mxu0 %v7012_v13  ;;  %3837 = vmatprep.subr.bf16.mxu1 %v7015_v15  ;;  %v7082_v13 = vld [vmem:[%s9522_s2 + $0x7e0] ss:$36 sps:$4 sm:$0xff]   ;;  %v7085_v15 = vld [vmem:[%s9522_s2 + $0x7e8] ss:$36 sps:$4 sm:$0xff]  }
 0x1d5   :  { %v1743_v11 = vpop.f32.mrb[0].mxu0  ;;  %v8441_v16 = vpop.f32.mrb[0].mxu1 }
 0x1d6   :  { %v1914_v17 = vmax.f32 %v1743_v11, 0.0  ;;  %v1745_v18 = vpop.f32.mrb[1].mxu0  ;;  %v1909_v19 = vpop.f32.mrb[1].mxu1  ;;  %v7090_v11 = vld [vmem:[%s9522_s2 + $0x82c] ss:$36 sps:$4 sm:$0xff]  }
 0x1d7   :  { %v1915_v14 = vmax.f32 %v1745_v18, 0.0  ;;  %v1747_v20 = vpop.f32.mrb[2].mxu0  ;;  %v1911_v21 = vpop.f32.mrb[2].mxu1  ;;  %v1917_v22 = vmax.f32 %v1909_v19, 0.0  ;;  %v7088_v18 = vld [vmem:[%s9522_s2 + $0x828] ss:$36 sps:$4 sm:$0xff]  }
 0x1d8   :  { %v1748_v23 = vpop.f32.mrb[3].mxu0  ;;  %v1912_v24 = vpop.f32.mrb[3].mxu1  ;;  %v8451_v28 = vpack.c.bf16 %v1914_v17, %v1914_v17  ;;  %v7093_v17 = vld [vmem:[%s9522_s2 + $0x834] ss:$36 sps:$4 sm:$0xff]   ;;  %v7099_v20 = vld [vmem:[%s9522_s2 + $0x87c] ss:$36 sps:$4 sm:$0xff]  }
 0x1d9   :  { %v8443_v25 = vpack.c.bf16 %v1915_v14, %v1915_v14  ;;  %v8461_v31 = vpack.c.bf16 %v1917_v22, %v1917_v22  ;;  %v7091_v19 = vld [vmem:[%s9522_s2 + $0x830] ss:$36 sps:$4 sm:$0xff]   ;;  %v7097_v22 = vld [vmem:[%s9522_s2 + $0x878] ss:$36 sps:$4 sm:$0xff]   ;;  %v7105_v24 = vld [vmem:[%s9522_s2 + $0x8c4] ss:$36 sps:$4 sm:$0xff]  }
 0x1da   :  { %v7096_v14 = vld [vmem:[%s9522_s2 + $0x874] ss:$36 sps:$4 sm:$0xff]   ;;  %v7102_v23 = vld [vmem:[%s9522_s2 + $0x8bc] ss:$36 sps:$4 sm:$0xff]  }
 0x1db   :  { %3746 = vmatprep.mubr.bf16.mxu0 %v8443_v25  ;;  %3828 = vmatprep.mubr.bf16.mxu1 %v8443_v25  ;;  %v7094_v21 = vld [vmem:[%s9522_s2 + $0x870] ss:$36 sps:$4 sm:$0xff]  }
 0x1dc   :  { %3747 = vmatmul.mubr.bf16.vlgmr.msra.gmra.mrb[4].mxu0 %v8451_v28  ;;  %3829 = vmatmul.mubr.bf16.vlgmr.msra.gmra.mrb[4].mxu1 %v8451_v28 }
 0x1dd   :  { %3756 = vmatpush1.bf16.msra.mxu0 %v7010_v26  ;;  %3838 = vmatpush1.bf16.msra.mxu1 %v7013_v27  ;;  %v7100_v26 = vld [vmem:[%s9522_s2 + $0x8b8] ss:$36 sps:$4 sm:$0xff]   ;;  %v7103_v27 = vld [vmem:[%s9522_s2 + $0x8c0] ss:$36 sps:$4 sm:$0xff]  }
 0x1de   :  { %3787 = vmatprep.mubr.bf16.mxu0 %v8461_v31  ;;  %3869 = vmatprep.mubr.bf16.mxu1 %v8461_v31 }
 0x1df   :  { %3757 = vmatprep.subr.bf16.mxu0 %v7018_v29  ;;  %3839 = vmatprep.subr.bf16.mxu1 %v7021_v30  ;;  %v1916_v29 = vmax.f32 %v8441_v16, 0.0  ;;  %v7108_v30 = vld [vmem:[%s9522_s2 + $0x14] ss:$36 sps:$4 sm:$0xff]  }
 0x1e0   :  { %v7109_v16 = vld [vmem:[%s9522_s2 + $0x18] ss:$36 sps:$4 sm:$0xff]  }
 0x1e1   :  { %3758 = vmatpush1.bf16.msra.mxu0 %v7016_v32  ;;  %3840 = vmatpush1.bf16.msra.mxu1 %v7019_v33  ;;  %v7111_v32 = vld [vmem:[%s9522_s2 + $0x1c] ss:$36 sps:$4 sm:$0xff]   ;;  %v7106_v33 = vld [vmem:[%s9522_s2 + $0x10] ss:$36 sps:$4 sm:$0xff]  }
 0x1e2   :  { %3759 = vmatprep.subr.bf16.mxu0 %v7024_v34  ;;  %3841 = vmatprep.subr.bf16.mxu1 %v7027_v35  ;;  %v8651_v34 = vpack.c.bf16 %v1916_v29, %v1916_v29  ;;  %v7114_v35 = vld [vmem:[%s9522_s2 + $0x5c] ss:$36 sps:$4 sm:$0xff]   ;;  %v7193_v29 = vld [vmem:[%s9522_s2 + $0x408] ss:$36 sps:$4 sm:$0xff]  }
 0x1e5   :  { %3760 = vmatpush1.bf16.msra.mxu0 %v7022_v36  ;;  %3842 = vmatpush1.bf16.msra.mxu1 %v7025_v37  ;;  %v7117_v36 = vld [vmem:[%s9522_s2 + $0x64] ss:$36 sps:$4 sm:$0xff]   ;;  %v7112_v37 = vld [vmem:[%s9522_s2 + $0x58] ss:$36 sps:$4 sm:$0xff]  }
 0x1e6   :  { %3761 = vmatprep.subr.bf16.mxu0 %v7030_v38  ;;  %3843 = vmatprep.subr.bf16.mxu1 %v7033_v39  ;;  %v7115_v38 = vld [vmem:[%s9522_s2 + $0x60] ss:$36 sps:$4 sm:$0xff]  }
 0x1e7   :  { %v7120_v39 = vld [vmem:[%s9522_s2 + $0xa4] ss:$36 sps:$4 sm:$0xff]  }
 0x1e9   :  { %3762 = vmatpush1.bf16.msra.mxu0 %v7028_v40  ;;  %3844 = vmatpush1.bf16.msra.mxu1 %v7031_v41  ;;  %v7123_v40 = vld [vmem:[%s9522_s2 + $0xac] ss:$36 sps:$4 sm:$0xff]   ;;  %v7118_v41 = vld [vmem:[%s9522_s2 + $0xa0] ss:$36 sps:$4 sm:$0xff]  }
 0x1ea   :  { %3763 = vmatprep.subr.bf16.mxu0 %v7036_v42  ;;  %3845 = vmatprep.subr.bf16.mxu1 %v7039_v43  ;;  %v7121_v42 = vld [vmem:[%s9522_s2 + $0xa8] ss:$36 sps:$4 sm:$0xff]  }
 0x1eb   :  { %v7126_v43 = vld [vmem:[%s9522_s2 + $0xec] ss:$36 sps:$4 sm:$0xff]  }
 0x1ed   :  { %3764 = vmatpush1.bf16.msra.mxu0 %v7034_v44  ;;  %3846 = vmatpush1.bf16.msra.mxu1 %v7037_v45  ;;  %v7129_v44 = vld [vmem:[%s9522_s2 + $0xf4] ss:$36 sps:$4 sm:$0xff]   ;;  %v7124_v45 = vld [vmem:[%s9522_s2 + $0xe8] ss:$36 sps:$4 sm:$0xff]  }
 0x1ee   :  { %3765 = vmatprep.subr.bf16.mxu0 %v7042_v46  ;;  %3847 = vmatprep.subr.bf16.mxu1 %v7045_v47  ;;  %v7127_v46 = vld [vmem:[%s9522_s2 + $0xf0] ss:$36 sps:$4 sm:$0xff]  }
 0x1ef   :  { %v7132_v47 = vld [vmem:[%s9522_s2 + $0x134] ss:$36 sps:$4 sm:$0xff]  }
 0x1f1   :  { %3766 = vmatpush1.bf16.msra.mxu0 %v7040_v48  ;;  %3848 = vmatpush1.bf16.msra.mxu1 %v7043_v49  ;;  %v7135_v48 = vld [vmem:[%s9522_s2 + $0x13c] ss:$36 sps:$4 sm:$0xff]   ;;  %v7130_v49 = vld [vmem:[%s9522_s2 + $0x130] ss:$36 sps:$4 sm:$0xff]  }
 0x1f2   :  { %3767 = vmatprep.subr.bf16.mxu0 %v7048_v50  ;;  %3849 = vmatprep.subr.bf16.mxu1 %v7051_v51  ;;  %v7133_v50 = vld [vmem:[%s9522_s2 + $0x138] ss:$36 sps:$4 sm:$0xff]  }
 0x1f3   :  { %v7138_v51 = vld [vmem:[%s9522_s2 + $0x17c] ss:$36 sps:$4 sm:$0xff]  }
 0x1f5   :  { %3768 = vmatpush1.bf16.msra.mxu0 %v7046_v52  ;;  %3850 = vmatpush1.bf16.msra.mxu1 %v7049_v53  ;;  %v7141_v52 = vld [vmem:[%s9522_s2 + $0x184] ss:$36 sps:$4 sm:$0xff]   ;;  %v7136_v53 = vld [vmem:[%s9522_s2 + $0x178] ss:$36 sps:$4 sm:$0xff]  }
 0x1f6   :  { %3769 = vmatprep.subr.bf16.mxu0 %v7054_v54  ;;  %3851 = vmatprep.subr.bf16.mxu1 %v7057_v55  ;;  %v7139_v54 = vld [vmem:[%s9522_s2 + $0x180] ss:$36 sps:$4 sm:$0xff]  }
 0x1f7   :  { %v7144_v55 = vld [vmem:[%s9522_s2 + $0x1c4] ss:$36 sps:$4 sm:$0xff]  }
 0x1f9   :  { %3770 = vmatpush1.bf16.msra.mxu0 %v7052_v56  ;;  %3852 = vmatpush1.bf16.msra.mxu1 %v7055_v57  ;;  %v7147_v56 = vld [vmem:[%s9522_s2 + $0x1cc] ss:$36 sps:$4 sm:$0xff]   ;;  %v7142_v57 = vld [vmem:[%s9522_s2 + $0x1c0] ss:$36 sps:$4 sm:$0xff]  }
 0x1fa   :  { %3771 = vmatprep.subr.bf16.mxu0 %v7060_v58  ;;  %3853 = vmatprep.subr.bf16.mxu1 %v7063_v59  ;;  %v7145_v58 = vld [vmem:[%s9522_s2 + $0x1c8] ss:$36 sps:$4 sm:$0xff]  }
 0x1fb   :  { %v7150_v59 = vld [vmem:[%s9522_s2 + $0x20c] ss:$36 sps:$4 sm:$0xff]  }
 0x1fd   :  { %3772 = vmatpush1.bf16.msra.mxu0 %v7058_v60  ;;  %3854 = vmatpush1.bf16.msra.mxu1 %v7061_v61  ;;  %v7153_v60 = vld [vmem:[%s9522_s2 + $0x214] ss:$36 sps:$4 sm:$0xff]   ;;  %v7148_v61 = vld [vmem:[%s9522_s2 + $0x208] ss:$36 sps:$4 sm:$0xff]  }
 0x1fe   :  { %3773 = vmatprep.subr.bf16.mxu0 %v7066_v62  ;;  %3855 = vmatprep.subr.bf16.mxu1 %v7069_v63  ;;  %v7151_v62 = vld [vmem:[%s9522_s2 + $0x210] ss:$36 sps:$4 sm:$0xff]  }
 0x1ff   :  { %v7156_v63 = vld [vmem:[%s9522_s2 + $0x254] ss:$36 sps:$4 sm:$0xff]  }
 0x201   :  { %3774 = vmatpush1.bf16.msra.mxu0 %v7064_v0  ;;  %3856 = vmatpush1.bf16.msra.mxu1 %v7067_v1  ;;  %v7159_v0 = vld [vmem:[%s9522_s2 + $0x25c] ss:$36 sps:$4 sm:$0xff]   ;;  %v7154_v1 = vld [vmem:[%s9522_s2 + $0x250] ss:$36 sps:$4 sm:$0xff]  }
 0x202   :  { %3775 = vmatprep.subr.bf16.mxu0 %v7072_v2  ;;  %3857 = vmatprep.subr.bf16.mxu1 %v7075_v3  ;;  %v7157_v2 = vld [vmem:[%s9522_s2 + $0x258] ss:$36 sps:$4 sm:$0xff]  }
 0x203   :  { %v7162_v3 = vld [vmem:[%s9522_s2 + $0x29c] ss:$36 sps:$4 sm:$0xff]  }
 0x205   :  { %3776 = vmatpush1.bf16.msra.mxu0 %v7070_v4  ;;  %3858 = vmatpush1.bf16.msra.mxu1 %v7073_v5  ;;  %v7165_v4 = vld [vmem:[%s9522_s2 + $0x2a4] ss:$36 sps:$4 sm:$0xff]   ;;  %v7160_v5 = vld [vmem:[%s9522_s2 + $0x298] ss:$36 sps:$4 sm:$0xff]  }
 0x206   :  { %3777 = vmatprep.subr.bf16.mxu0 %v7078_v6  ;;  %3859 = vmatprep.subr.bf16.mxu1 %v7081_v7  ;;  %v7163_v6 = vld [vmem:[%s9522_s2 + $0x2a0] ss:$36 sps:$4 sm:$0xff]  }
 0x207   :  { %v7168_v7 = vld [vmem:[%s9522_s2 + $0x2e4] ss:$36 sps:$4 sm:$0xff]  }
 0x209   :  { %3778 = vmatpush1.bf16.msra.mxu0 %v7076_v8  ;;  %3860 = vmatpush1.bf16.msra.mxu1 %v7079_v9  ;;  %v7171_v8 = vld [vmem:[%s9522_s2 + $0x2ec] ss:$36 sps:$4 sm:$0xff]   ;;  %v7166_v9 = vld [vmem:[%s9522_s2 + $0x2e0] ss:$36 sps:$4 sm:$0xff]  }
 0x20a   :  { %3779 = vmatprep.subr.bf16.mxu0 %v7084_v10  ;;  %3861 = vmatprep.subr.bf16.mxu1 %v7087_v12  ;;  %v7169_v10 = vld [vmem:[%s9522_s2 + $0x2e8] ss:$36 sps:$4 sm:$0xff]  }
 0x20b   :  { %v7174_v12 = vld [vmem:[%s9522_s2 + $0x32c] ss:$36 sps:$4 sm:$0xff]  }
 0x20d   :  { %3780 = vmatpush1.bf16.msra.mxu0 %v7082_v13  ;;  %3862 = vmatpush1.bf16.msra.mxu1 %v7085_v15  ;;  %v7177_v13 = vld [vmem:[%s9522_s2 + $0x334] ss:$36 sps:$4 sm:$0xff]   ;;  %v7172_v15 = vld [vmem:[%s9522_s2 + $0x328] ss:$36 sps:$4 sm:$0xff]  }
 0x20e   :  { %3781 = vmatprep.subr.bf16.mxu0 %v7090_v11  ;;  %3863 = vmatprep.subr.bf16.mxu1 %v7093_v17  ;;  %v7175_v11 = vld [vmem:[%s9522_s2 + $0x330] ss:$36 sps:$4 sm:$0xff]  }
 0x20f   :  { %v7180_v17 = vld [vmem:[%s9522_s2 + $0x374] ss:$36 sps:$4 sm:$0xff]  }
 0x211   :  { %3782 = vmatpush1.bf16.msra.mxu0 %v7088_v18  ;;  %3864 = vmatpush1.bf16.msra.mxu1 %v7091_v19  ;;  %v7183_v18 = vld [vmem:[%s9522_s2 + $0x37c] ss:$36 sps:$4 sm:$0xff]   ;;  %v7178_v19 = vld [vmem:[%s9522_s2 + $0x370] ss:$36 sps:$4 sm:$0xff]  }
 0x212   :  { %3783 = vmatprep.subr.bf16.mxu0 %v7096_v14  ;;  %3865 = vmatprep.subr.bf16.mxu1 %v7099_v20  ;;  %v7181_v14 = vld [vmem:[%s9522_s2 + $0x378] ss:$36 sps:$4 sm:$0xff]  }
 0x213   :  { %v7186_v20 = vld [vmem:[%s9522_s2 + $0x3bc] ss:$36 sps:$4 sm:$0xff]  }
 0x215   :  { %3784 = vmatpush1.bf16.msra.mxu0 %v7094_v21  ;;  %3866 = vmatpush1.bf16.msra.mxu1 %v7097_v22  ;;  %v7189_v21 = vld [vmem:[%s9522_s2 + $0x3c4] ss:$36 sps:$4 sm:$0xff]   ;;  %v7184_v22 = vld [vmem:[%s9522_s2 + $0x3b8] ss:$36 sps:$4 sm:$0xff]  }
 0x216   :  { %3785 = vmatprep.subr.bf16.mxu0 %v7102_v23  ;;  %3867 = vmatprep.subr.bf16.mxu1 %v7105_v24  ;;  %v7187_v23 = vld [vmem:[%s9522_s2 + $0x3c0] ss:$36 sps:$4 sm:$0xff]  }
 0x217   :  { %v7192_v24 = vld [vmem:[%s9522_s2 + $0x404] ss:$36 sps:$4 sm:$0xff]  }
 0x219   :  { %3786 = vmatpush1.bf16.msra.mxu0 %v7100_v26  ;;  %3868 = vmatpush1.bf16.msra.mxu1 %v7103_v27  ;;  %v7195_v26 = vld [vmem:[%s9522_s2 + $0x40c] ss:$36 sps:$4 sm:$0xff]   ;;  %v7190_v27 = vld [vmem:[%s9522_s2 + $0x400] ss:$36 sps:$4 sm:$0xff]  }
 0x21a   :  { %3878 = vmatprep.subr.bf16.mxu0 %v7108_v30  ;;  %3960 = vmatprep.subr.bf16.mxu1 %v7111_v32  ;;  %v7198_v30 = vld [vmem:[%s9522_s2 + $0x44c] ss:$36 sps:$4 sm:$0xff]   ;;  %v7201_v32 = vld [vmem:[%s9522_s2 + $0x454] ss:$36 sps:$4 sm:$0xff]  }
 0x21c   :  { %3788 = vmatmul.mubr.bf16.vlgmr.msra.gmra.mrb[4].mxu0 %v8651_v34  ;;  %3870 = vmatmul.mubr.bf16.vlgmr.msra.gmra.mrb[4].mxu1 %v8651_v34 }
 0x21d   :  { %3879 = vmatpush1.bf16.msra.mxu0 %v7106_v33  ;;  %3910 = vmatprep.mubr.bf16.mxu0 %v8443_v25  ;;  %v7196_v33 = vld [vmem:[%s9522_s2 + $0x448] ss:$36 sps:$4 sm:$0xff]  }
 0x21e   :  { %3961 = vmatpush1.bf16.msra.mxu1 %v7109_v16  ;;  %3992 = vmatprep.mubr.bf16.mxu1 %v8443_v25  ;;  %v7199_v16 = vld [vmem:[%s9522_s2 + $0x450] ss:$36 sps:$4 sm:$0xff]  }
 0x21f   :  { %3880 = vmatprep.subr.bf16.mxu0 %v7114_v35  ;;  %3962 = vmatprep.subr.bf16.mxu1 %v7117_v36  ;;  %v7204_v35 = vld [vmem:[%s9522_s2 + $0x494] ss:$36 sps:$4 sm:$0xff]   ;;  %v7207_v36 = vld [vmem:[%s9522_s2 + $0x49c] ss:$36 sps:$4 sm:$0xff]  }
 0x221   :  { %3881 = vmatpush1.bf16.msra.mxu0 %v7112_v37  ;;  %v7202_v37 = vld [vmem:[%s9522_s2 + $0x490] ss:$36 sps:$4 sm:$0xff]  }
 0x222   :  { %3963 = vmatpush1.bf16.msra.mxu1 %v7115_v38  ;;  %3882 = vmatprep.subr.bf16.mxu0 %v7120_v39  ;;  %v7205_v38 = vld [vmem:[%s9522_s2 + $0x498] ss:$36 sps:$4 sm:$0xff]  }
 0x223   :  { %3964 = vmatprep.subr.bf16.mxu1 %v7123_v40  ;;  %v7210_v39 = vld [vmem:[%s9522_s2 + $0x4dc] ss:$36 sps:$4 sm:$0xff]   ;;  %v7213_v40 = vld [vmem:[%s9522_s2 + $0x4e4] ss:$36 sps:$4 sm:$0xff]  }
 0x225   :  { %3883 = vmatpush1.bf16.msra.mxu0 %v7118_v41  ;;  %v7208_v41 = vld [vmem:[%s9522_s2 + $0x4d8] ss:$36 sps:$4 sm:$0xff]  }
 0x226   :  { %3965 = vmatpush1.bf16.msra.mxu1 %v7121_v42  ;;  %3884 = vmatprep.subr.bf16.mxu0 %v7126_v43  ;;  %v7211_v42 = vld [vmem:[%s9522_s2 + $0x4e0] ss:$36 sps:$4 sm:$0xff]  }
 0x227   :  { %3966 = vmatprep.subr.bf16.mxu1 %v7129_v44  ;;  %v7216_v43 = vld [vmem:[%s9522_s2 + $0x524] ss:$36 sps:$4 sm:$0xff]   ;;  %v7219_v44 = vld [vmem:[%s9522_s2 + $0x52c] ss:$36 sps:$4 sm:$0xff]  }
 0x229   :  { %3885 = vmatpush1.bf16.msra.mxu0 %v7124_v45  ;;  %v7214_v45 = vld [vmem:[%s9522_s2 + $0x520] ss:$36 sps:$4 sm:$0xff]  }
 0x22a   :  { %3967 = vmatpush1.bf16.msra.mxu1 %v7127_v46  ;;  %3886 = vmatprep.subr.bf16.mxu0 %v7132_v47  ;;  %v7217_v46 = vld [vmem:[%s9522_s2 + $0x528] ss:$36 sps:$4 sm:$0xff]  }
 0x22b   :  { %3968 = vmatprep.subr.bf16.mxu1 %v7135_v48  ;;  %v7222_v47 = vld [vmem:[%s9522_s2 + $0x56c] ss:$36 sps:$4 sm:$0xff]   ;;  %v7225_v48 = vld [vmem:[%s9522_s2 + $0x574] ss:$36 sps:$4 sm:$0xff]  }
 0x22d   :  { %3887 = vmatpush1.bf16.msra.mxu0 %v7130_v49  ;;  %v7220_v49 = vld [vmem:[%s9522_s2 + $0x568] ss:$36 sps:$4 sm:$0xff]  }
 0x22e   :  { %3969 = vmatpush1.bf16.msra.mxu1 %v7133_v50  ;;  %3888 = vmatprep.subr.bf16.mxu0 %v7138_v51  ;;  %v7223_v50 = vld [vmem:[%s9522_s2 + $0x570] ss:$36 sps:$4 sm:$0xff]  }
 0x22f   :  { %3970 = vmatprep.subr.bf16.mxu1 %v7141_v52  ;;  %v7228_v51 = vld [vmem:[%s9522_s2 + $0x5b4] ss:$36 sps:$4 sm:$0xff]   ;;  %v7231_v52 = vld [vmem:[%s9522_s2 + $0x5bc] ss:$36 sps:$4 sm:$0xff]  }
 0x231   :  { %3889 = vmatpush1.bf16.msra.mxu0 %v7136_v53  ;;  %v7226_v53 = vld [vmem:[%s9522_s2 + $0x5b0] ss:$36 sps:$4 sm:$0xff]  }
 0x232   :  { %3971 = vmatpush1.bf16.msra.mxu1 %v7139_v54  ;;  %3890 = vmatprep.subr.bf16.mxu0 %v7144_v55  ;;  %v7229_v54 = vld [vmem:[%s9522_s2 + $0x5b8] ss:$36 sps:$4 sm:$0xff]  }
 0x233   :  { %3972 = vmatprep.subr.bf16.mxu1 %v7147_v56  ;;  %v7234_v55 = vld [vmem:[%s9522_s2 + $0x5fc] ss:$36 sps:$4 sm:$0xff]   ;;  %v7237_v56 = vld [vmem:[%s9522_s2 + $0x604] ss:$36 sps:$4 sm:$0xff]  }
 0x235   :  { %3891 = vmatpush1.bf16.msra.mxu0 %v7142_v57  ;;  %v7232_v57 = vld [vmem:[%s9522_s2 + $0x5f8] ss:$36 sps:$4 sm:$0xff]  }
 0x236   :  { %3973 = vmatpush1.bf16.msra.mxu1 %v7145_v58  ;;  %3892 = vmatprep.subr.bf16.mxu0 %v7150_v59  ;;  %v7235_v58 = vld [vmem:[%s9522_s2 + $0x600] ss:$36 sps:$4 sm:$0xff]  }
 0x237   :  { %3974 = vmatprep.subr.bf16.mxu1 %v7153_v60  ;;  %v7240_v59 = vld [vmem:[%s9522_s2 + $0x644] ss:$36 sps:$4 sm:$0xff]   ;;  %v7243_v60 = vld [vmem:[%s9522_s2 + $0x64c] ss:$36 sps:$4 sm:$0xff]  }
 0x239   :  { %3893 = vmatpush1.bf16.msra.mxu0 %v7148_v61  ;;  %v7238_v61 = vld [vmem:[%s9522_s2 + $0x640] ss:$36 sps:$4 sm:$0xff]  }
 0x23a   :  { %3975 = vmatpush1.bf16.msra.mxu1 %v7151_v62  ;;  %3894 = vmatprep.subr.bf16.mxu0 %v7156_v63  ;;  %v7241_v62 = vld [vmem:[%s9522_s2 + $0x648] ss:$36 sps:$4 sm:$0xff]  }
 0x23b   :  { %3976 = vmatprep.subr.bf16.mxu1 %v7159_v0  ;;  %v7246_v63 = vld [vmem:[%s9522_s2 + $0x68c] ss:$36 sps:$4 sm:$0xff]   ;;  %v7249_v0 = vld [vmem:[%s9522_s2 + $0x694] ss:$36 sps:$4 sm:$0xff]  }
 0x23d   :  { %3895 = vmatpush1.bf16.msra.mxu0 %v7154_v1  ;;  %v7244_v1 = vld [vmem:[%s9522_s2 + $0x688] ss:$36 sps:$4 sm:$0xff]  }
 0x23e   :  { %3977 = vmatpush1.bf16.msra.mxu1 %v7157_v2  ;;  %3896 = vmatprep.subr.bf16.mxu0 %v7162_v3  ;;  %v7247_v2 = vld [vmem:[%s9522_s2 + $0x690] ss:$36 sps:$4 sm:$0xff]  }
 0x23f   :  { %3978 = vmatprep.subr.bf16.mxu1 %v7165_v4  ;;  %v7252_v3 = vld [vmem:[%s9522_s2 + $0x6d4] ss:$36 sps:$4 sm:$0xff]   ;;  %v7255_v4 = vld [vmem:[%s9522_s2 + $0x6dc] ss:$36 sps:$4 sm:$0xff]  }
 0x241   :  { %3897 = vmatpush1.bf16.msra.mxu0 %v7160_v5  ;;  %v7250_v5 = vld [vmem:[%s9522_s2 + $0x6d0] ss:$36 sps:$4 sm:$0xff]  }
 0x242   :  { %3979 = vmatpush1.bf16.msra.mxu1 %v7163_v6  ;;  %3898 = vmatprep.subr.bf16.mxu0 %v7168_v7  ;;  %v7253_v6 = vld [vmem:[%s9522_s2 + $0x6d8] ss:$36 sps:$4 sm:$0xff]  }
 0x243   :  { %3980 = vmatprep.subr.bf16.mxu1 %v7171_v8  ;;  %v7258_v7 = vld [vmem:[%s9522_s2 + $0x71c] ss:$36 sps:$4 sm:$0xff]   ;;  %v7261_v8 = vld [vmem:[%s9522_s2 + $0x724] ss:$36 sps:$4 sm:$0xff]  }
 0x245   :  { %3899 = vmatpush1.bf16.msra.mxu0 %v7166_v9  ;;  %v7256_v9 = vld [vmem:[%s9522_s2 + $0x718] ss:$36 sps:$4 sm:$0xff]  }
 0x246   :  { %3981 = vmatpush1.bf16.msra.mxu1 %v7169_v10  ;;  %3900 = vmatprep.subr.bf16.mxu0 %v7174_v12  ;;  %v7259_v10 = vld [vmem:[%s9522_s2 + $0x720] ss:$36 sps:$4 sm:$0xff]  }
 0x247   :  { %3982 = vmatprep.subr.bf16.mxu1 %v7177_v13  ;;  %v7264_v12 = vld [vmem:[%s9522_s2 + $0x764] ss:$36 sps:$4 sm:$0xff]   ;;  %v7267_v13 = vld [vmem:[%s9522_s2 + $0x76c] ss:$36 sps:$4 sm:$0xff]  }
 0x249   :  { %3901 = vmatpush1.bf16.msra.mxu0 %v7172_v15  ;;  %v7262_v15 = vld [vmem:[%s9522_s2 + $0x760] ss:$36 sps:$4 sm:$0xff]  }
 0x24a   :  { %3983 = vmatpush1.bf16.msra.mxu1 %v7175_v11  ;;  %3902 = vmatprep.subr.bf16.mxu0 %v7180_v17  ;;  %v7265_v11 = vld [vmem:[%s9522_s2 + $0x768] ss:$36 sps:$4 sm:$0xff]  }
 0x24b   :  { %3984 = vmatprep.subr.bf16.mxu1 %v7183_v18  ;;  %v7270_v17 = vld [vmem:[%s9522_s2 + $0x7ac] ss:$36 sps:$4 sm:$0xff]   ;;  %v7273_v18 = vld [vmem:[%s9522_s2 + $0x7b4] ss:$36 sps:$4 sm:$0xff]  }
 0x24d   :  { %3903 = vmatpush1.bf16.msra.mxu0 %v7178_v19  ;;  %v7268_v19 = vld [vmem:[%s9522_s2 + $0x7a8] ss:$36 sps:$4 sm:$0xff]  }
 0x24e   :  { %3985 = vmatpush1.bf16.msra.mxu1 %v7181_v14  ;;  %3904 = vmatprep.subr.bf16.mxu0 %v7186_v20  ;;  %v7271_v14 = vld [vmem:[%s9522_s2 + $0x7b0] ss:$36 sps:$4 sm:$0xff]  }
 0x24f   :  { %3986 = vmatprep.subr.bf16.mxu1 %v7189_v21  ;;  %v7276_v20 = vld [vmem:[%s9522_s2 + $0x7f4] ss:$36 sps:$4 sm:$0xff]   ;;  %v7279_v21 = vld [vmem:[%s9522_s2 + $0x7fc] ss:$36 sps:$4 sm:$0xff]  }
 0x251   :  { %3905 = vmatpush1.bf16.msra.mxu0 %v7184_v22  ;;  %v7274_v22 = vld [vmem:[%s9522_s2 + $0x7f0] ss:$36 sps:$4 sm:$0xff]  }
 0x252   :  { %3987 = vmatpush1.bf16.msra.mxu1 %v7187_v23  ;;  %3906 = vmatprep.subr.bf16.mxu0 %v7192_v24  ;;  %v7277_v23 = vld [vmem:[%s9522_s2 + $0x7f8] ss:$36 sps:$4 sm:$0xff]  }
 0x253   :  { %3988 = vmatprep.subr.bf16.mxu1 %v7195_v26  ;;  %v7282_v24 = vld [vmem:[%s9522_s2 + $0x83c] ss:$36 sps:$4 sm:$0xff]   ;;  %v7285_v26 = vld [vmem:[%s9522_s2 + $0x844] ss:$36 sps:$4 sm:$0xff]  }
 0x255   :  { %3907 = vmatpush1.bf16.msra.mxu0 %v7190_v27  ;;  %v7280_v27 = vld [vmem:[%s9522_s2 + $0x838] ss:$36 sps:$4 sm:$0xff]  }
 0x256   :  { %3989 = vmatpush1.bf16.msra.mxu1 %v7193_v29  ;;  %3908 = vmatprep.subr.bf16.mxu0 %v7198_v30  ;;  %v7283_v29 = vld [vmem:[%s9522_s2 + $0x840] ss:$36 sps:$4 sm:$0xff]  }
 0x257   :  { %3990 = vmatprep.subr.bf16.mxu1 %v7201_v32  ;;  %v7288_v30 = vld [vmem:[%s9522_s2 + $0x884] ss:$36 sps:$4 sm:$0xff]   ;;  %v7291_v32 = vld [vmem:[%s9522_s2 + $0x88c] ss:$36 sps:$4 sm:$0xff]  }
 0x259   :  { %3909 = vmatpush1.bf16.msra.mxu0 %v7196_v33  ;;  %v7286_v33 = vld [vmem:[%s9522_s2 + $0x880] ss:$36 sps:$4 sm:$0xff]  }
 0x25a   :  { %3991 = vmatpush1.bf16.msra.mxu1 %v7199_v16  ;;  %3919 = vmatprep.subr.bf16.mxu0 %v7204_v35  ;;  %v7289_v16 = vld [vmem:[%s9522_s2 + $0x888] ss:$36 sps:$4 sm:$0xff]  }
 0x25b   :  { %4001 = vmatprep.subr.bf16.mxu1 %v7207_v36  ;;  %v7294_v35 = vld [vmem:[%s9522_s2 + $0x8cc] ss:$36 sps:$4 sm:$0xff]   ;;  %v7297_v36 = vld [vmem:[%s9522_s2 + $0x8d4] ss:$36 sps:$4 sm:$0xff]  }
 0x25c   :  { %3911 = vmatmul.mubr.bf16.vlgmr.msra.gmra.mrb[8].mxu0 %v8451_v28 }
 0x25d   :  { %3993 = vmatmul.mubr.bf16.vlgmr.msra.gmra.mrb[8].mxu1 %v8451_v28  ;;  %3920 = vmatpush1.bf16.msra.mxu0 %v7202_v37  ;;  %v7292_v37 = vld [vmem:[%s9522_s2 + $0x8c8] ss:$36 sps:$4 sm:$0xff]  }
 0x25e   :  { %3951 = vmatprep.mubr.bf16.mxu0 %v8461_v31  ;;  %4002 = vmatpush1.bf16.msra.mxu1 %v7205_v38  ;;  %v7295_v38 = vld [vmem:[%s9522_s2 + $0x8d0] ss:$36 sps:$4 sm:$0xff]  }
 0x25f   :  { %4033 = vmatprep.mubr.bf16.mxu1 %v8461_v31  ;;  %3921 = vmatprep.subr.bf16.mxu0 %v7210_v39  ;;  %v7298_v39 = vld [vmem:[%s9522_s2 + $0x260] ss:$36 sps:$4 sm:$0xff]  }
 0x260   :  { %4003 = vmatprep.subr.bf16.mxu1 %v7213_v40  ;;  %v7299_v40 = vld [vmem:[%s9522_s2 + $0x6e0] ss:$36 sps:$4 sm:$0xff]  }
 0x261   :  { %3922 = vmatpush1.bf16.msra.mxu0 %v7208_v41  ;;  %v7300_v41 = vld [vmem:[%s9522_s2 + $0x20] ss:$36 sps:$4 sm:$0xff]  }
 0x262   :  { %4004 = vmatpush1.bf16.msra.mxu1 %v7211_v42  ;;  %3923 = vmatprep.subr.bf16.mxu0 %v7216_v43  ;;  %v7301_v42 = vld [vmem:[%s9522_s2 + $0x4a0] ss:$36 sps:$4 sm:$0xff]   ;;  %v7302_v43 = vld [vmem:[%s9522_s2 + $0x2a8] ss:$36 sps:$4 sm:$0xff]  }
 0x263   :  { %4005 = vmatprep.subr.bf16.mxu1 %v7219_v44  ;;  %v7303_v44 = vld [vmem:[%s9522_s2 + $0x728] ss:$36 sps:$4 sm:$0xff]  }
 0x265   :  { %3924 = vmatpush1.bf16.msra.mxu0 %v7214_v45  ;;  %v7304_v45 = vld [vmem:[%s9522_s2 + $0x68] ss:$36 sps:$4 sm:$0xff]  }
 0x266   :  { %4006 = vmatpush1.bf16.msra.mxu1 %v7217_v46  ;;  %3925 = vmatprep.subr.bf16.mxu0 %v7222_v47  ;;  %v7305_v46 = vld [vmem:[%s9522_s2 + $0x4e8] ss:$36 sps:$4 sm:$0xff]   ;;  %v7306_v47 = vld [vmem:[%s9522_s2 + $0x2f0] ss:$36 sps:$4 sm:$0xff]  }
 0x267   :  { %4007 = vmatprep.subr.bf16.mxu1 %v7225_v48  ;;  %v7307_v48 = vld [vmem:[%s9522_s2 + $0x770] ss:$36 sps:$4 sm:$0xff]  }
 0x269   :  { %3926 = vmatpush1.bf16.msra.mxu0 %v7220_v49  ;;  %v7309_v49 = vld [vmem:[%s9522_s2 + $0x530] ss:$36 sps:$4 sm:$0xff]  }
 0x26a   :  { %4008 = vmatpush1.bf16.msra.mxu1 %v7223_v50  ;;  %3927 = vmatprep.subr.bf16.mxu0 %v7228_v51  ;;  %v7311_v50 = vld [vmem:[%s9522_s2 + $0x7b8] ss:$36 sps:$4 sm:$0xff]  }
 0x26b   :  { %4009 = vmatprep.subr.bf16.mxu1 %v7231_v52  ;;  %v7312_v51 = vld [vmem:[%s9522_s2 + $0xf8] ss:$36 sps:$4 sm:$0xff]  }
 0x26c   :  { %v7313_v52 = vld [vmem:[%s9522_s2 + $0x578] ss:$36 sps:$4 sm:$0xff]  }
 0x26d   :  { %3928 = vmatpush1.bf16.msra.mxu0 %v7226_v53  ;;  %v7314_v53 = vld [vmem:[%s9522_s2 + $0x380] ss:$36 sps:$4 sm:$0xff]  }
 0x26e   :  { %4010 = vmatpush1.bf16.msra.mxu1 %v7229_v54  ;;  %3929 = vmatprep.subr.bf16.mxu0 %v7234_v55  ;;  %v7315_v54 = vld [vmem:[%s9522_s2 + $0x800] ss:$36 sps:$4 sm:$0xff]  }
 0x26f   :  { %4011 = vmatprep.subr.bf16.mxu1 %v7237_v56  ;;  %v7316_v55 = vld [vmem:[%s9522_s2 + $0x140] ss:$36 sps:$4 sm:$0xff]  }
 0x270   :  { %v7317_v56 = vld [vmem:[%s9522_s2 + $0x5c0] ss:$36 sps:$4 sm:$0xff]  }
 0x271   :  { %3930 = vmatpush1.bf16.msra.mxu0 %v7232_v57  ;;  %v7318_v57 = vld [vmem:[%s9522_s2 + $0x3c8] ss:$36 sps:$4 sm:$0xff]  }
 0x272   :  { %4012 = vmatpush1.bf16.msra.mxu1 %v7235_v58  ;;  %3931 = vmatprep.subr.bf16.mxu0 %v7240_v59  ;;  %v7319_v58 = vld [vmem:[%s9522_s2 + $0x848] ss:$36 sps:$4 sm:$0xff]  }
 0x273   :  { %4013 = vmatprep.subr.bf16.mxu1 %v7243_v60  ;;  %v7320_v59 = vld [vmem:[%s9522_s2 + $0x188] ss:$36 sps:$4 sm:$0xff]  }
 0x274   :  { %v7321_v60 = vld [vmem:[%s9522_s2 + $0x608] ss:$36 sps:$4 sm:$0xff]  }
 0x275   :  { %3932 = vmatpush1.bf16.msra.mxu0 %v7238_v61  ;;  %v7322_v61 = vld [vmem:[%s9522_s2 + $0x410] ss:$36 sps:$4 sm:$0xff]  }
 0x276   :  { %4014 = vmatpush1.bf16.msra.mxu1 %v7241_v62  ;;  %3933 = vmatprep.subr.bf16.mxu0 %v7246_v63  ;;  %v7323_v62 = vld [vmem:[%s9522_s2 + $0x890] ss:$36 sps:$4 sm:$0xff]  }
 0x277   :  { %4015 = vmatprep.subr.bf16.mxu1 %v7249_v0  ;;  %v7324_v63 = vld [vmem:[%s9522_s2 + $0x1d0] ss:$36 sps:$4 sm:$0xff]  }
 0x278   :  { %v7325_v0 = vld [vmem:[%s9522_s2 + $0x650] ss:$36 sps:$4 sm:$0xff]  }
 0x279   :  { %3934 = vmatpush1.bf16.msra.mxu0 %v7244_v1  ;;  %v7326_v1 = vld [vmem:[%s9522_s2 + $0x458] ss:$36 sps:$4 sm:$0xff]  }
 0x27a   :  { %4016 = vmatpush1.bf16.msra.mxu1 %v7247_v2  ;;  %3935 = vmatprep.subr.bf16.mxu0 %v7252_v3  ;;  %v7327_v2 = vld [vmem:[%s9522_s2 + $0x8d8] ss:$36 sps:$4 sm:$0xff]  }
 0x27b   :  { %4017 = vmatprep.subr.bf16.mxu1 %v7255_v4  ;;  %v7328_v3 = vld [vmem:[%s9522_s2 + $0x218] ss:$36 sps:$4 sm:$0xff]  }
 0x27c   :  { %v7329_v4 = vld [vmem:[%s9522_s2 + $0x698] ss:$36 sps:$4 sm:$0xff]  }
 0x27d   :  { %3936 = vmatpush1.bf16.msra.mxu0 %v7250_v5 }
 0x27e   :  { %4018 = vmatpush1.bf16.msra.mxu1 %v7253_v6  ;;  %3937 = vmatprep.subr.bf16.mxu0 %v7258_v7 }
 0x27f   :  { %4019 = vmatprep.subr.bf16.mxu1 %v7261_v8 }
 0x281   :  { %3938 = vmatpush1.bf16.msra.mxu0 %v7256_v9 }
 0x282   :  { %4020 = vmatpush1.bf16.msra.mxu1 %v7259_v10  ;;  %3939 = vmatprep.subr.bf16.mxu0 %v7264_v12 }
 0x283   :  { %4021 = vmatprep.subr.bf16.mxu1 %v7267_v13 }
 0x285   :  { %3940 = vmatpush1.bf16.msra.mxu0 %v7262_v15 }
 0x286   :  { %4022 = vmatpush1.bf16.msra.mxu1 %v7265_v11  ;;  %3941 = vmatprep.subr.bf16.mxu0 %v7270_v17 }
 0x287   :  { %4023 = vmatprep.subr.bf16.mxu1 %v7273_v18  ;;  %v7418_v18 = vmov 0.0  }
 0x289   :  { %3942 = vmatpush1.bf16.msra.mxu0 %v7268_v19  ;;  %v7332_v19 = vld [vmem:[%s9523_s3 + $0x10] sm:$0xff]  }
 0x28a   :  { %4024 = vmatpush1.bf16.msra.mxu1 %v7271_v14  ;;  %3943 = vmatprep.subr.bf16.mxu0 %v7276_v20  ;;  %v7333_v14 = vld [vmem:[%s9523_s3 + $0x18] sm:$0xff]   ;;  %v7334_v20 = vld [vmem:[%s9523_s3 + $0x20] sm:$0xff]  }
 0x28b   :  { %4025 = vmatprep.subr.bf16.mxu1 %v7279_v21  ;;  %v7335_v21 = vld [vmem:[%s9523_s3 + $0x28] sm:$0xff]  }
 0x28d   :  { %3944 = vmatpush1.bf16.msra.mxu0 %v7274_v22  ;;  %v7336_v22 = vld [vmem:[%s9523_s3 + $0x30] sm:$0xff]  }
 0x28e   :  { %4026 = vmatpush1.bf16.msra.mxu1 %v7277_v23  ;;  %3945 = vmatprep.subr.bf16.mxu0 %v7282_v24  ;;  %v7337_v23 = vld [vmem:[%s9523_s3 + $0x38] sm:$0xff]   ;;  %v7338_v24 = vld [vmem:[%s9523_s3 + $0x40] sm:$0xff]  }
 0x28f   :  { %4027 = vmatprep.subr.bf16.mxu1 %v7285_v26  ;;  %v7339_v26 = vld [vmem:[%s9523_s3 + $0x48] sm:$0xff]  }
 0x291   :  { %3946 = vmatpush1.bf16.msra.mxu0 %v7280_v27  ;;  %v7340_v27 = vld [vmem:[%s9523_s3 + $0x50] sm:$0xff]  }
 0x292   :  { %4028 = vmatpush1.bf16.msra.mxu1 %v7283_v29  ;;  %3947 = vmatprep.subr.bf16.mxu0 %v7288_v30  ;;  %v7341_v29 = vld [vmem:[%s9523_s3 + $0x58] sm:$0xff]   ;;  %v7342_v30 = vld [vmem:[%s9523_s3 + $0x60] sm:$0xff]  }
 0x293   :  { %4029 = vmatprep.subr.bf16.mxu1 %v7291_v32  ;;  %v7343_v32 = vld [vmem:[%s9523_s3 + $0x68] sm:$0xff]  }
 0x295   :  { %3948 = vmatpush1.bf16.msra.mxu0 %v7286_v33  ;;  %v7344_v33 = vld [vmem:[%s9523_s3 + $0x70] sm:$0xff]  }
 0x296   :  { %4030 = vmatpush1.bf16.msra.mxu1 %v7289_v16  ;;  %3949 = vmatprep.subr.bf16.mxu0 %v7294_v35 }
 0x297   :  { %4031 = vmatprep.subr.bf16.mxu1 %v7297_v36 }
 0x299   :  { %3950 = vmatpush1.bf16.msra.mxu0 %v7292_v37 }
 0x29a   :  { %4032 = vmatpush1.bf16.msra.mxu1 %v7295_v38  ;;  %6105 = vmatprep.subr.bf16.mxu0 %v7298_v39 }
 0x29b   :  { %6127 = vmatprep.subr.bf16.mxu1 %v7299_v40 }
 0x29c   :  { %3952 = vmatmul.mubr.bf16.vlgmr.msra.gmra.mrb[8].mxu0 %v8651_v34 }
 0x29d   :  { %4034 = vmatmul.mubr.bf16.vlgmr.msra.gmra.mrb[8].mxu1 %v8651_v34  ;;  %6106 = vmatpush3.bf16.msra.mxu0 %v7300_v41 }
 0x29e   :  { %4074 = vmatprep.mubr.bf16.mxu0 %v8443_v25  ;;  %6128 = vmatpush3.bf16.msra.mxu1 %v7301_v42  ;;  %v7308_v25 = vld [vmem:[%s9522_s2 + $0xb0] ss:$36 sps:$4 sm:$0xff]  }
 0x29f   :  { %4114 = vmatprep.mubr.bf16.mxu1 %v8461_v31  ;;  %6107 = vmatprep.subr.bf16.mxu0 %v7302_v43  ;;  %v7310_v31 = vld [vmem:[%s9522_s2 + $0x338] ss:$36 sps:$4 sm:$0xff]  }
 0x2a0   :  { %6129 = vmatprep.subr.bf16.mxu1 %v7303_v44 }
 0x2a1   :  { %6108 = vmatpush3.bf16.msra.mxu0 %v7304_v45 }
 0x2a2   :  { %6130 = vmatpush3.bf16.msra.mxu1 %v7305_v46  ;;  %6109 = vmatprep.subr.bf16.mxu0 %v7306_v47 }
 0x2a3   :  { %6131 = vmatprep.subr.bf16.mxu1 %v7307_v48 }
 0x2a5   :  { %6110 = vmatpush3.bf16.msra.mxu0 %v7308_v25 }
 0x2a6   :  { %6132 = vmatpush3.bf16.msra.mxu1 %v7309_v49  ;;  %6111 = vmatprep.subr.bf16.mxu0 %v7310_v31 }
 0x2a7   :  { %6133 = vmatprep.subr.bf16.mxu1 %v7311_v50 }
 0x2a9   :  { %6112 = vmatpush3.bf16.msra.mxu0 %v7312_v51 }
 0x2aa   :  { %6134 = vmatpush3.bf16.msra.mxu1 %v7313_v52  ;;  %6113 = vmatprep.subr.bf16.mxu0 %v7314_v53 }
 0x2ab   :  { %6135 = vmatprep.subr.bf16.mxu1 %v7315_v54 }
 0x2ad   :  { %6114 = vmatpush3.bf16.msra.mxu0 %v7316_v55 }
 0x2ae   :  { %6136 = vmatpush3.bf16.msra.mxu1 %v7317_v56  ;;  %6115 = vmatprep.subr.bf16.mxu0 %v7318_v57  ;;  %v7345_v57 = vld [vmem:[%s9523_s3 + $0x78] sm:$0xff]  }
 0x2af   :  { %6137 = vmatprep.subr.bf16.mxu1 %v7319_v58  ;;  %v7346_v58 = vld [vmem:[%s9523_s3 + $0x80] sm:$0xff]  }
 0x2b1   :  { %6116 = vmatpush3.bf16.msra.mxu0 %v7320_v59  ;;  %v7348_v59 = vld [vmem:[%s9523_s3 + $0x88] sm:$0xff]  }
 0x2b2   :  { %6138 = vmatpush3.bf16.msra.mxu1 %v7321_v60  ;;  %6117 = vmatprep.subr.bf16.mxu0 %v7322_v61  ;;  %v7350_v60 = vld [vmem:[%s9523_s3 + $0x90] sm:$0xff]   ;;  %v7352_v61 = vld [vmem:[%s9523_s3 + $0x98] sm:$0xff]  }
 0x2b3   :  { %6139 = vmatprep.subr.bf16.mxu1 %v7323_v62  ;;  %v7354_v62 = vld [vmem:[%s9523_s3 + $0xa0] sm:$0xff]  }
 0x2b5   :  { %6118 = vmatpush3.bf16.msra.mxu0 %v7324_v63  ;;  %v7356_v63 = vld [vmem:[%s9523_s3 + $0xa8] sm:$0xff]  }
 0x2b6   :  { %6140 = vmatpush3.bf16.msra.mxu1 %v7325_v0  ;;  %6119 = vmatprep.subr.bf16.mxu0 %v7326_v1 }
 0x2b7   :  { %6141 = vmatprep.subr.bf16.mxu1 %v7327_v2 }
 0x2b9   :  { %6120 = vmatpush3.bf16.msra.mxu0 %v7328_v3 }
 0x2ba   :  { %6142 = vmatpush3.bf16.msra.mxu1 %v7329_v4  ;;  %6248 = vmatprep.subr.bf16.mxu0 %v7418_v18  ;;  %v7347_v4 = vld [vmem:[%s9523_s3 + $0x100] sm:$0xff]  }
 0x2bb   :  { %6268 = vmatprep.subr.bf16.mxu1 %v7418_v18 }
 0x2bc   :  { %4075 = vmatmul.mubr.bf16.vlgmr.msra.gmra.mrb[12].mxu0 %v8451_v28  ;;  %v7330_v28 = vld [vmem:[%s9523_s3] sm:$0xff]  }
 0x2bd   :  { %4115 = vmatmul.mubr.bf16.vlgmr.msra.gmra.mrb[12].mxu1 %v8651_v34  ;;  %6249 = vmatpush3.bf16.msra.mxu0 %v7330_v28  ;;  %v7331_v34 = vld [vmem:[%s9523_s3 + $0x8] sm:$0xff]  }
 0x2be   :  { %6250 = vmatprep.subr.bf16.mxu0 %v7418_v18  ;;  %6264 = vmatprep.mubr.msk.bf16.mxu0 %vm7419_vm0, %v7418_v18 }
 0x2bf   :  { %6284 = vmatprep.mubr.msk.bf16.mxu1 %vm7419_vm0, %v7418_v18  ;;  %6269 = vmatpush3.bf16.msra.mxu1 %v7338_v24  ;;  %v7363_v24 = vld [vmem:[%s9523_s3 + $0xc8] sm:$0xff]  }
 0x2c0   :  { %6270 = vmatprep.subr.bf16.mxu1 %v7418_v18 }
 0x2c1   :  { %6251 = vmatpush3.bf16.msra.mxu0 %v7331_v34 }
 0x2c2   :  { %6252 = vmatprep.subr.bf16.mxu0 %v7418_v18 }
 0x2c3   :  { %6271 = vmatpush3.bf16.msra.mxu1 %v7339_v26  ;;  %v7364_v26 = vld [vmem:[%s9523_s3 + $0xd0] sm:$0xff]  }
 0x2c4   :  { %6272 = vmatprep.subr.bf16.mxu1 %v7418_v18 }
 0x2c5   :  { %6253 = vmatpush3.bf16.msra.mxu0 %v7332_v19 }
 0x2c6   :  { %6254 = vmatprep.subr.bf16.mxu0 %v7418_v18 }
 0x2c7   :  { %6273 = vmatpush3.bf16.msra.mxu1 %v7340_v27  ;;  %v7365_v27 = vld [vmem:[%s9523_s3 + $0xd8] sm:$0xff]  }
 0x2c8   :  { %6274 = vmatprep.subr.bf16.mxu1 %v7418_v18 }
 0x2c9   :  { %6255 = vmatpush3.bf16.msra.mxu0 %v7333_v14 }
 0x2ca   :  { %6256 = vmatprep.subr.bf16.mxu0 %v7418_v18 }
 0x2cb   :  { %6275 = vmatpush3.bf16.msra.mxu1 %v7341_v29  ;;  %v7366_v29 = vld [vmem:[%s9523_s3 + $0xe0] sm:$0xff]  }
 0x2cc   :  { %6276 = vmatprep.subr.bf16.mxu1 %v7418_v18 }
 0x2cd   :  { %6257 = vmatpush3.bf16.msra.mxu0 %v7334_v20 }
 0x2ce   :  { %6258 = vmatprep.subr.bf16.mxu0 %v7418_v18 }
 0x2cf   :  { %6277 = vmatpush3.bf16.msra.mxu1 %v7342_v30  ;;  %v7367_v30 = vld [vmem:[%s9523_s3 + $0xe8] sm:$0xff]  }
 0x2d0   :  { %6278 = vmatprep.subr.bf16.mxu1 %v7418_v18 }
 0x2d1   :  { %6259 = vmatpush3.bf16.msra.mxu0 %v7335_v21 }
 0x2d2   :  { %6260 = vmatprep.subr.bf16.mxu0 %v7418_v18 }
 0x2d3   :  { %6279 = vmatpush3.bf16.msra.mxu1 %v7343_v32  ;;  %v7368_v32 = vld [vmem:[%s9523_s3 + $0xf0] sm:$0xff]  }
 0x2d4   :  { %6280 = vmatprep.subr.bf16.mxu1 %v7418_v18 }
 0x2d5   :  { %6261 = vmatpush3.bf16.msra.mxu0 %v7336_v22  ;;  %v7362_v22 = vld [vmem:[%s9523_s3 + $0xc0] sm:$0xff]  }
 0x2d6   :  { %6262 = vmatprep.subr.bf16.mxu0 %v7418_v18 }
 0x2d7   :  { %6281 = vmatpush3.bf16.msra.mxu1 %v7344_v33  ;;  %v7369_v33 = vld [vmem:[%s9523_s3 + $0xf8] sm:$0xff]  }
 0x2d8   :  { %6282 = vmatprep.subr.bf16.mxu1 %v7418_v18 }
 0x2d9   :  { %6263 = vmatpush3.bf16.msra.mxu0 %v7337_v23 }
 0x2da   :  { %6288 = vmatprep.subr.bf16.mxu0 %v7418_v18 }
 0x2db   :  { %6283 = vmatpush3.bf16.msra.mxu1 %v7345_v57  ;;  %v7383_v57 = vld [vmem:[%s9523_s3 + $0x1e8] sm:$0xff]  }
 0x2dc   :  { %6308 = vmatprep.subr.bf16.mxu1 %v7418_v18 }
 0x2ef   :  { %v3789_v5 = vpop.f32.mrb[4].mxu0  ;;  %v3871_v6 = vpop.f32.mrb[4].mxu1 }
 0x2f0   :  { %v3791_v7 = vpop.f32.mrb[5].mxu0  ;;  %v3873_v8 = vpop.f32.mrb[5].mxu1 }
 0x2f1   :  { %v4122_v9 = vmax.f32 %v3789_v5, %v3791_v7  ;;  %v3793_v10 = vpop.f32.mrb[6].mxu0  ;;  %v3875_v12 = vpop.f32.mrb[6].mxu1  ;;  %v7349_v7 = vld [vmem:[%s9523_s3 + $0x108] sm:$0xff]  }
 0x2f2   :  { %v3794_v13 = vpop.f32.mrb[7].mxu0  ;;  %v3876_v15 = vpop.f32.mrb[7].mxu1  ;;  %v7355_v10 = vld [vmem:[%s9523_s3 + $0x120] sm:$0xff]   ;;  %v7357_v12 = vld [vmem:[%s9523_s3 + $0x128] sm:$0xff]  }
 0x2f3   :  { %v4123_v11 = vmax.f32 %v4122_v9, %v3871_v6  ;;  %v7353_v9 = vld [vmem:[%s9523_s3 + $0x118] sm:$0xff]   ;;  %v7358_v13 = vld [vmem:[%s9523_s3 + $0xb0] sm:$0xff]  }
 0x2f4   :  { %v7359_v15 = vld [vmem:[%s9523_s3 + $0x130] sm:$0xff]  }
 0x2f5   :  { %v4124_v17 = vmax.f32 %v4123_v11, %v3873_v8  ;;  %v7351_v8 = vld [vmem:[%s9523_s3 + $0x110] sm:$0xff]   ;;  %v7360_v11 = vld [vmem:[%s9523_s3 + $0xb8] sm:$0xff]  }
 0x36f   :  { %v3953_v16 = vpop.f32.mrb[8].mxu0 }
 0x370   :  { %v4125_v35 = vmax.f32 %v4124_v17, %v3953_v16  ;;  %v4035_v36 = vpop.f32.mrb[8].mxu1  ;;  %v3955_v37 = vpop.f32.mrb[9].mxu0  ;;  %v7361_v17 = vld [vmem:[%s9523_s3 + $0x138] sm:$0xff]   ;;  %v7370_v16 = vld [vmem:[%s9523_s3 + $0x140] sm:$0xff]  }
 0x371   :  { %v4037_v38 = vpop.f32.mrb[9].mxu1  ;;  %v3957_v39 = vpop.f32.mrb[10].mxu0 }
 0x372   :  { %v4126_v40 = vmax.f32 %v4125_v35, %v3955_v37  ;;  %v4039_v41 = vpop.f32.mrb[10].mxu1  ;;  %v3958_v42 = vpop.f32.mrb[11].mxu0  ;;  %v7371_v35 = vld [vmem:[%s9523_s3 + $0x148] sm:$0xff]   ;;  %v7373_v37 = vld [vmem:[%s9523_s3 + $0x158] sm:$0xff]  }
 0x373   :  { %v4040_v43 = vpop.f32.mrb[11].mxu1  ;;  %v7375_v39 = vld [vmem:[%s9523_s3 + $0x168] sm:$0xff]  }
 0x374   :  { %v4127_v44 = vmax.f32 %v4126_v40, %v4035_v36  ;;  %v7372_v36 = vld [vmem:[%s9523_s3 + $0x150] sm:$0xff]  }
 0x375   :  { %v7376_v40 = vld [vmem:[%s9523_s3 + $0x170] sm:$0xff]  }
 0x376   :  { %v4128_v45 = vmax.f32 %v4127_v44, %v4037_v38  ;;  %v7374_v38 = vld [vmem:[%s9523_s3 + $0x160] sm:$0xff]  }
 0x38f   :  { %v6121_v46 = vpop.f32.mrb[12].mxu0 }
 0x390   :  { %v6143_v47 = vpop.f32.mrb[12].mxu1  ;;  %v6122_v48 = vpop.f32.mrb[13].mxu0 }
 0x391   :  { %v6123_v25 = vadd.f32 %v6122_v48, %v6121_v46  ;;  %v6144_v49 = vpop.f32.mrb[13].mxu1  ;;  %v6124_v31 = vpop.f32.mrb[14].mxu0 }
 0x392   :  { %v6145_v50 = vadd.f32 %v6144_v49, %v6143_v47  ;;  %v6146_v51 = vpop.f32.mrb[14].mxu1  ;;  %v6125_v52 = vpop.f32.mrb[15].mxu0  ;;  %v7377_v47 = vld [vmem:[%s9523_s3 + $0x178] sm:$0xff]  }
 0x393   :  { %v6147_v53 = vpop.f32.mrb[15].mxu1 }
 0x394   :  { %v4117_v54 = vadd.f32 %v6145_v50, %v6123_v25  ;;  %v7378_v50 = vld [vmem:[%s9523_s3 + $0x1c0] sm:$0xff]   ;;  %v7379_v53 = vld [vmem:[%s9523_s3 + $0x1c8] sm:$0xff]  }
 0x396   :  { %v9204_v55 = vmax.f32 %v4128_v45, %v4117_v54  ;;  %v7380_v54 = vld [vmem:[%s9523_s3 + $0x1d0] sm:$0xff]  }
 0x398   :  { %v4130_v56 = vpack.c.bf16 %v9204_v55, %v9204_v55 }
 0x39a   :  { %6265 = vmatmul.mubr.bf16.vlgmr.msra.gmra.mrb[16].mxu0 %v4130_v56  ;;  %v7382_v56 = vld [vmem:[%s9523_s3 + $0x1e0] sm:$0xff]  }
 0x39b   :  { %6304 = vmatprep.mubr.msk.bf16.mxu0 %vm7419_vm0, %v7418_v18  ;;  %6289 = vmatpush3.bf16.msra.mxu0 %v7346_v58  ;;  %v7384_v58 = vld [vmem:[%s9523_s3 + $0x1f0] sm:$0xff]  }
 0x39c   :  { %6290 = vmatprep.subr.bf16.mxu0 %v7418_v18 }
 0x39f   :  { %6291 = vmatpush3.bf16.msra.mxu0 %v7348_v59  ;;  %v7385_v59 = vld [vmem:[%s9523_s3 + $0x1f8] sm:$0xff]  }
 0x3a0   :  { %6292 = vmatprep.subr.bf16.mxu0 %v7418_v18 }
 0x3a3   :  { %6293 = vmatpush3.bf16.msra.mxu0 %v7350_v60  ;;  %v7386_v60 = vld [vmem:[%s9523_s3 + $0x180] sm:$0xff]  }
 0x3a4   :  { %6294 = vmatprep.subr.bf16.mxu0 %v7418_v18 }
 0x3a7   :  { %6295 = vmatpush3.bf16.msra.mxu0 %v7352_v61  ;;  %v7387_v61 = vld [vmem:[%s9523_s3 + $0x188] sm:$0xff]  }
 0x3a8   :  { %6296 = vmatprep.subr.bf16.mxu0 %v7418_v18 }
 0x3ab   :  { %6297 = vmatpush3.bf16.msra.mxu0 %v7354_v62  ;;  %v7388_v62 = vld [vmem:[%s9523_s3 + $0x190] sm:$0xff]  }
 0x3ac   :  { %6298 = vmatprep.subr.bf16.mxu0 %v7418_v18 }
 0x3af   :  { %6299 = vmatpush3.bf16.msra.mxu0 %v7356_v63  ;;  %v7389_v63 = vld [vmem:[%s9523_s3 + $0x198] sm:$0xff]  }
 0x3b0   :  { %6300 = vmatprep.subr.bf16.mxu0 %v7418_v18 }
 0x3b3   :  { %6301 = vmatpush3.bf16.msra.mxu0 %v7358_v13 }
 0x3b4   :  { %6302 = vmatprep.subr.bf16.mxu0 %v7418_v18 }
 0x3b7   :  { %6303 = vmatpush3.bf16.msra.mxu0 %v7360_v11 }
 0x3b8   :  { %6348 = vmatprep.subr.bf16.mxu0 %v7418_v18 }
 0x46d   :  { %v4229_v0 = vpop.f32.mrb[16].mxu0 }
 0x46e   :  { %v4235_v1 = vmax.f32 %v4229_v0, 0.0  ;;  %v6266_v2 = vpop.f32.mrb[17].mxu0  ;;  %v7390_v0 = vld [vmem:[%s9523_s3 + $0x1a0] sm:$0xff]  }
 0x46f   :  { %v4232_v3 = vpop.f32.mrb[18].mxu0  ;;  %v7392_v2 = vld [vmem:[%s9523_s3 + $0x1b0] sm:$0xff]  }
 0x470   :  { %v4236_v5 = vpack.c.bf16 %v4235_v1, %v4235_v1  ;;  %v6267_v6 = vpop.f32.mrb[19].mxu0  ;;  %v7391_v1 = vld [vmem:[%s9523_s3 + $0x1a8] sm:$0xff]   ;;  %v7393_v3 = vld [vmem:[%s9523_s3 + $0x1b8] sm:$0xff]  }
 0x471   :  { %v7396_v6 = vld [vmem:[%s9523_s3 + $0x210] sm:$0xff]  }
 0x472   :  { %6285 = vmatmul.mubr.bf16.vlgmr.msra.gmra.mrb[16].mxu1 %v4236_v5  ;;  %v7395_v5 = vld [vmem:[%s9523_s3 + $0x208] sm:$0xff]  }
 0x473   :  { %6309 = vmatpush3.bf16.msra.mxu1 %v7347_v4  ;;  %6324 = vmatprep.mubr.msk.bf16.mxu1 %vm7419_vm0, %v7418_v18  ;;  %v7394_v4 = vld [vmem:[%s9523_s3 + $0x200] sm:$0xff]  }
 0x474   :  { %6310 = vmatprep.subr.bf16.mxu1 %v7418_v18 }
 0x477   :  { %6311 = vmatpush3.bf16.msra.mxu1 %v7349_v7  ;;  %v7397_v7 = vld [vmem:[%s9523_s3 + $0x218] sm:$0xff]  }
 0x478   :  { %6312 = vmatprep.subr.bf16.mxu1 %v7418_v18 }
 0x47b   :  { %6313 = vmatpush3.bf16.msra.mxu1 %v7351_v8  ;;  %v7398_v8 = vld [vmem:[%s9523_s3 + $0x220] sm:$0xff]  }
 0x47c   :  { %6314 = vmatprep.subr.bf16.mxu1 %v7418_v18 }
 0x47f   :  { %6315 = vmatpush3.bf16.msra.mxu1 %v7353_v9  ;;  %v7399_v9 = vld [vmem:[%s9523_s3 + $0x228] sm:$0xff]  }
 0x480   :  { %6316 = vmatprep.subr.bf16.mxu1 %v7418_v18 }
 0x483   :  { %6317 = vmatpush3.bf16.msra.mxu1 %v7355_v10  ;;  %v7400_v10 = vld [vmem:[%s9523_s3 + $0x230] sm:$0xff]  }
 0x484   :  { %6318 = vmatprep.subr.bf16.mxu1 %v7418_v18 }
 0x487   :  { %6319 = vmatpush3.bf16.msra.mxu1 %v7357_v12 }
 0x488   :  { %6320 = vmatprep.subr.bf16.mxu1 %v7418_v18 }
 0x48b   :  { %6321 = vmatpush3.bf16.msra.mxu1 %v7359_v15 }
 0x48c   :  { %6322 = vmatprep.subr.bf16.mxu1 %v7418_v18 }
 0x48f   :  { %6323 = vmatpush3.bf16.msra.mxu1 %v7361_v17 }
 0x490   :  { %6328 = vmatprep.subr.bf16.mxu1 %v7418_v18 }
 0x545   :  { %v4336_v28 = vpop.f32.mrb[16].mxu1 }
 0x546   :  { %v4337_v34 = vadd.f32 %v4336_v28, %v9204_v55  ;;  %v6286_v19 = vpop.f32.mrb[17].mxu1  ;;  %v7381_v55 = vld [vmem:[%s9523_s3 + $0x1d8] sm:$0xff]  }
 0x547   :  { %v4339_v14 = vpop.f32.mrb[18].mxu1 }
 0x548   :  { %v4342_v20 = vmax.f32 %v4337_v34, 0.0  ;;  %v6287_v21 = vpop.f32.mrb[19].mxu1  ;;  %v7401_v34 = vld [vmem:[%s9523_s3 + $0x238] sm:$0xff]  }
 0x54a   :  { %v4343_v23 = vpack.c.bf16 %v4342_v20, %v4342_v20 }
 0x54c   :  { %6305 = vmatmul.mubr.bf16.vlgmr.msra.gmra.mrb[20].mxu0 %v4343_v23  ;;  %6325 = vmatmul.mubr.bf16.vlgmr.msra.gmra.mrb[20].mxu1 %v4343_v23 }
 0x54d   :  { %6329 = vmatpush3.bf16.msra.mxu1 %v7362_v22  ;;  %6344 = vmatprep.mubr.msk.bf16.mxu1 %vm7419_vm0, %v7418_v18  ;;  %v7402_v22 = vld [vmem:[%s9523_s3 + $0x280] sm:$0xff]  }
 0x54e   :  { %6330 = vmatprep.subr.bf16.mxu1 %v7418_v18  ;;  %6364 = vmatprep.mubr.msk.bf16.mxu0 %vm7419_vm0, %v7418_v18 }
 0x54f   :  { %6349 = vmatpush3.bf16.msra.mxu0 %v7370_v16  ;;  %v7409_v16 = vld [vmem:[%s9523_s3 + $0x2b8] sm:$0xff]  }
 0x550   :  { %6350 = vmatprep.subr.bf16.mxu0 %v7418_v18 }
 0x551   :  { %6331 = vmatpush3.bf16.msra.mxu1 %v7363_v24 }
 0x552   :  { %6332 = vmatprep.subr.bf16.mxu1 %v7418_v18 }
 0x553   :  { %6351 = vmatpush3.bf16.msra.mxu0 %v7371_v35  ;;  %v7410_v35 = vld [vmem:[%s9523_s3 + $0x240] sm:$0xff]  }
 0x554   :  { %6352 = vmatprep.subr.bf16.mxu0 %v7418_v18 }
 0x555   :  { %6333 = vmatpush3.bf16.msra.mxu1 %v7364_v26  ;;  %v7403_v26 = vld [vmem:[%s9523_s3 + $0x288] sm:$0xff]  }
 0x556   :  { %6334 = vmatprep.subr.bf16.mxu1 %v7418_v18 }
 0x557   :  { %6353 = vmatpush3.bf16.msra.mxu0 %v7372_v36  ;;  %v7411_v36 = vld [vmem:[%s9523_s3 + $0x248] sm:$0xff]  }
 0x558   :  { %6354 = vmatprep.subr.bf16.mxu0 %v7418_v18 }
 0x559   :  { %6335 = vmatpush3.bf16.msra.mxu1 %v7365_v27  ;;  %v7404_v27 = vld [vmem:[%s9523_s3 + $0x290] sm:$0xff]  }
 0x55a   :  { %6336 = vmatprep.subr.bf16.mxu1 %v7418_v18 }
 0x55b   :  { %6355 = vmatpush3.bf16.msra.mxu0 %v7373_v37  ;;  %v7412_v37 = vld [vmem:[%s9523_s3 + $0x250] sm:$0xff]  }
 0x55c   :  { %6356 = vmatprep.subr.bf16.mxu0 %v7418_v18 }
 0x55d   :  { %6337 = vmatpush3.bf16.msra.mxu1 %v7366_v29  ;;  %v7405_v29 = vld [vmem:[%s9523_s3 + $0x298] sm:$0xff]  }
 0x55e   :  { %6338 = vmatprep.subr.bf16.mxu1 %v7418_v18 }
 0x55f   :  { %6357 = vmatpush3.bf16.msra.mxu0 %v7374_v38  ;;  %v7413_v38 = vld [vmem:[%s9523_s3 + $0x258] sm:$0xff]  }
 0x560   :  { %6358 = vmatprep.subr.bf16.mxu0 %v7418_v18 }
 0x561   :  { %6339 = vmatpush3.bf16.msra.mxu1 %v7367_v30  ;;  %v7406_v30 = vld [vmem:[%s9523_s3 + $0x2a0] sm:$0xff]  }
 0x562   :  { %6340 = vmatprep.subr.bf16.mxu1 %v7418_v18 }
 0x563   :  { %6359 = vmatpush3.bf16.msra.mxu0 %v7375_v39  ;;  %v7414_v39 = vld [vmem:[%s9523_s3 + $0x260] sm:$0xff]  }
 0x564   :  { %6360 = vmatprep.subr.bf16.mxu0 %v7418_v18 }
 0x565   :  { %6341 = vmatpush3.bf16.msra.mxu1 %v7368_v32  ;;  %v7407_v32 = vld [vmem:[%s9523_s3 + $0x2a8] sm:$0xff]  }
 0x566   :  { %6342 = vmatprep.subr.bf16.mxu1 %v7418_v18 }
 0x567   :  { %6361 = vmatpush3.bf16.msra.mxu0 %v7376_v40  ;;  %v7415_v40 = vld [vmem:[%s9523_s3 + $0x268] sm:$0xff]  }
 0x568   :  { %6362 = vmatprep.subr.bf16.mxu0 %v7418_v18 }
 0x569   :  { %6343 = vmatpush3.bf16.msra.mxu1 %v7369_v33  ;;  %v7408_v33 = vld [vmem:[%s9523_s3 + $0x2b0] sm:$0xff]  }
 0x56a   :  { %6408 = vmatprep.subr.bf16.mxu1 %v7418_v18 }
 0x56b   :  { %6363 = vmatpush3.bf16.msra.mxu0 %v7377_v47 }
 0x56c   :  { %6368 = vmatprep.subr.bf16.mxu0 %v7418_v18 }
 0x61f   :  { %v4443_v41 = vpop.f32.mrb[20].mxu0 }
 0x620   :  { %v4449_v42 = vmax.f32 %v4443_v41, 0.0  ;;  %v6306_v43 = vpop.f32.mrb[21].mxu0  ;;  %v7416_v41 = vld [vmem:[%s9523_s3 + $0x270] sm:$0xff]  }
 0x621   :  { %v4446_v44 = vpop.f32.mrb[22].mxu0 }
 0x622   :  { %v4450_v45 = vpack.c.bf16 %v4449_v42, %v4449_v42  ;;  %v6307_v46 = vpop.f32.mrb[23].mxu0  ;;  %v7417_v42 = vld [vmem:[%s9523_s3 + $0x278] sm:$0xff]  }
 0x624   :  { %6345 = vmatmul.mubr.bf16.vlgmr.msra.gmra.mrb[20].mxu1 %v4450_v45 }
 0x625   :  { %6424 = vmatprep.mubr.msk.bf16.mxu1 %vm7419_vm0, %v7418_v18  ;;  %6409 = vmatpush3.bf16.msra.mxu1 %v7394_v4 }
 0x626   :  { %6410 = vmatprep.subr.bf16.mxu1 %v7418_v18 }
 0x629   :  { %6411 = vmatpush3.bf16.msra.mxu1 %v7395_v5 }
 0x62a   :  { %6412 = vmatprep.subr.bf16.mxu1 %v7418_v18 }
 0x62d   :  { %6413 = vmatpush3.bf16.msra.mxu1 %v7396_v6 }
 0x62e   :  { %6414 = vmatprep.subr.bf16.mxu1 %v7418_v18 }
 0x631   :  { %6415 = vmatpush3.bf16.msra.mxu1 %v7397_v7 }
 0x632   :  { %6416 = vmatprep.subr.bf16.mxu1 %v7418_v18 }
 0x635   :  { %6417 = vmatpush3.bf16.msra.mxu1 %v7398_v8 }
 0x636   :  { %6418 = vmatprep.subr.bf16.mxu1 %v7418_v18 }
 0x639   :  { %6419 = vmatpush3.bf16.msra.mxu1 %v7399_v9 }
 0x63a   :  { %6420 = vmatprep.subr.bf16.mxu1 %v7418_v18 }
 0x63d   :  { %6421 = vmatpush3.bf16.msra.mxu1 %v7400_v10 }
 0x63e   :  { %6422 = vmatprep.subr.bf16.mxu1 %v7418_v18 }
 0x641   :  { %6423 = vmatpush3.bf16.msra.mxu1 %v7401_v34 }
 0x642   :  { %6428 = vmatprep.subr.bf16.mxu1 %v7418_v18 }
 0x6f7   :  { %v4655_v48 = vpop.f32.mrb[20].mxu1 }
 0x6f8   :  { %v4661_v25 = vmax.f32 %v4655_v48, 0.0  ;;  %v6346_v49 = vpop.f32.mrb[21].mxu1 }
 0x6f9   :  { %v4658_v31 = vpop.f32.mrb[22].mxu1 }
 0x6fa   :  { %v4662_v51 = vpack.c.bf16 %v4661_v25, %v4661_v25  ;;  %v6347_v52 = vpop.f32.mrb[23].mxu1 }
 0x6fc   :  { %6365 = vmatmul.mubr.bf16.vlgmr.msra.gmra.mrb[24].mxu0 %v4662_v51 }
 0x6fd   :  { %6369 = vmatpush3.bf16.msra.mxu0 %v7378_v50  ;;  %6384 = vmatprep.mubr.msk.bf16.mxu0 %vm7419_vm0, %v7418_v18 }
 0x6fe   :  { %6370 = vmatprep.subr.bf16.mxu0 %v7418_v18 }
 0x701   :  { %6371 = vmatpush3.bf16.msra.mxu0 %v7379_v53 }
 0x702   :  { %6372 = vmatprep.subr.bf16.mxu0 %v7418_v18 }
 0x705   :  { %6373 = vmatpush3.bf16.msra.mxu0 %v7380_v54 }
 0x706   :  { %6374 = vmatprep.subr.bf16.mxu0 %v7418_v18 }
 0x709   :  { %6375 = vmatpush3.bf16.msra.mxu0 %v7381_v55 }
 0x70a   :  { %6376 = vmatprep.subr.bf16.mxu0 %v7418_v18 }
 0x70d   :  { %6377 = vmatpush3.bf16.msra.mxu0 %v7382_v56 }
 0x70e   :  { %6378 = vmatprep.subr.bf16.mxu0 %v7418_v18 }
 0x711   :  { %6379 = vmatpush3.bf16.msra.mxu0 %v7383_v57 }
 0x712   :  { %6380 = vmatprep.subr.bf16.mxu0 %v7418_v18 }
 0x715   :  { %6381 = vmatpush3.bf16.msra.mxu0 %v7384_v58 }
 0x716   :  { %6382 = vmatprep.subr.bf16.mxu0 %v7418_v18 }
 0x719   :  { %6383 = vmatpush3.bf16.msra.mxu0 %v7385_v59 }
 0x71a   :  { %6388 = vmatprep.subr.bf16.mxu0 %v7418_v18 }
 0x71c   :  { %6385 = vmatmul.mubr.bf16.vlgmr.msra.gmra.mrb[28].mxu0 %v4662_v51 }
 0x71d   :  { %6389 = vmatpush3.bf16.msra.mxu0 %v7386_v60  ;;  %6404 = vmatprep.mubr.msk.bf16.mxu0 %vm7419_vm0, %v7418_v18 }
 0x71e   :  { %6390 = vmatprep.subr.bf16.mxu0 %v7418_v18 }
 0x721   :  { %6391 = vmatpush3.bf16.msra.mxu0 %v7387_v61 }
 0x722   :  { %6392 = vmatprep.subr.bf16.mxu0 %v7418_v18 }
 0x725   :  { %6393 = vmatpush3.bf16.msra.mxu0 %v7388_v62 }
 0x726   :  { %6394 = vmatprep.subr.bf16.mxu0 %v7418_v18 }
 0x729   :  { %6395 = vmatpush3.bf16.msra.mxu0 %v7389_v63 }
 0x72a   :  { %6396 = vmatprep.subr.bf16.mxu0 %v7418_v18 }
 0x72d   :  { %6397 = vmatpush3.bf16.msra.mxu0 %v7390_v0 }
 0x72e   :  { %6398 = vmatprep.subr.bf16.mxu0 %v7418_v18 }
 0x731   :  { %6399 = vmatpush3.bf16.msra.mxu0 %v7391_v1 }
 0x732   :  { %6400 = vmatprep.subr.bf16.mxu0 %v7418_v18 }
 0x735   :  { %6401 = vmatpush3.bf16.msra.mxu0 %v7392_v2 }
 0x736   :  { %6402 = vmatprep.subr.bf16.mxu0 %v7418_v18 }
 0x739   :  { %6403 = vmatpush3.bf16.msra.mxu0 %v7393_v3 }
 0x7cf   :  { %v4762_v12 = vpop.f32.mrb[24].mxu0 }
 0x7d0   :  { %v4768_v13 = vmax.f32 %v4762_v12, 0.0  ;;  %v6366_v15 = vpop.f32.mrb[25].mxu0 }
 0x7d1   :  { %v4765_v11 = vpop.f32.mrb[26].mxu0 }
 0x7d2   :  { %v4769_v17 = vpack.c.bf16 %v4768_v13, %v4768_v13  ;;  %v6367_v28 = vpop.f32.mrb[27].mxu0 }
 0x7d4   :  { %6405 = vmatmul.mubr.bf16.vlgmr.msra.gmra.mrb[28].mxu0 %v4769_v17 }
 0x8a7   :  { %v4974_v19 = vpop.f32.mrb[28].mxu0 }
 0x8a8   :  { %v4980_v14 = vmax.f32 %v4974_v19, 0.0  ;;  %v6406_v20 = vpop.f32.mrb[29].mxu0 }
 0x8a9   :  { %v4977_v21 = vpop.f32.mrb[30].mxu0 }
 0x8aa   :  { %v4981_v23 = vpack.c.bf16 %v4980_v14, %v4980_v14  ;;  %v6407_v24 = vpop.f32.mrb[31].mxu0 }
 0x8ac   :  { %6425 = vmatmul.mubr.bf16.vlgmr.msra.gmra.mrb[24].mxu1 %v4981_v23 }
 0x8ad   :  { %6429 = vmatpush3.bf16.msra.mxu1 %v7402_v22  ;;  %6444 = vmatprep.mubr.msk.bf16.mxu1 %vm7419_vm0, %v7418_v18 }
 0x8ae   :  { %6430 = vmatprep.subr.bf16.mxu1 %v7418_v18 }
 0x8b1   :  { %6431 = vmatpush3.bf16.msra.mxu1 %v7403_v26 }
 0x8b2   :  { %6432 = vmatprep.subr.bf16.mxu1 %v7418_v18 }
 0x8b5   :  { %6433 = vmatpush3.bf16.msra.mxu1 %v7404_v27 }
 0x8b6   :  { %6434 = vmatprep.subr.bf16.mxu1 %v7418_v18 }
 0x8b9   :  { %6435 = vmatpush3.bf16.msra.mxu1 %v7405_v29 }
 0x8ba   :  { %6436 = vmatprep.subr.bf16.mxu1 %v7418_v18 }
 0x8bd   :  { %6437 = vmatpush3.bf16.msra.mxu1 %v7406_v30 }
 0x8be   :  { %6438 = vmatprep.subr.bf16.mxu1 %v7418_v18 }
 0x8c1   :  { %6439 = vmatpush3.bf16.msra.mxu1 %v7407_v32 }
 0x8c2   :  { %6440 = vmatprep.subr.bf16.mxu1 %v7418_v18 }
 0x8c5   :  { %6441 = vmatpush3.bf16.msra.mxu1 %v7408_v33 }
 0x8c6   :  { %6442 = vmatprep.subr.bf16.mxu1 %v7418_v18 }
 0x8c9   :  { %6443 = vmatpush3.bf16.msra.mxu1 %v7409_v16 }
 0x8ca   :  { %6448 = vmatprep.subr.bf16.mxu1 %v7418_v18 }
 0x8cc   :  { %6445 = vmatmul.mubr.bf16.vlgmr.msra.gmra.mrb[28].mxu1 %v4981_v23 }
 0x8cd   :  { %6449 = vmatpush3.bf16.msra.mxu1 %v7410_v35  ;;  %6464 = vmatprep.mubr.msk.bf16.mxu1 %vm7419_vm0, %v7418_v18 }
 0x8ce   :  { %6450 = vmatprep.subr.bf16.mxu1 %v7418_v18 }
 0x8d1   :  { %6451 = vmatpush3.bf16.msra.mxu1 %v7411_v36 }
 0x8d2   :  { %6452 = vmatprep.subr.bf16.mxu1 %v7418_v18 }
 0x8d5   :  { %6453 = vmatpush3.bf16.msra.mxu1 %v7412_v37 }
 0x8d6   :  { %6454 = vmatprep.subr.bf16.mxu1 %v7418_v18 }
 0x8d9   :  { %6455 = vmatpush3.bf16.msra.mxu1 %v7413_v38 }
 0x8da   :  { %6456 = vmatprep.subr.bf16.mxu1 %v7418_v18 }
 0x8dd   :  { %6457 = vmatpush3.bf16.msra.mxu1 %v7414_v39 }
 0x8de   :  { %6458 = vmatprep.subr.bf16.mxu1 %v7418_v18 }
 0x8e1   :  { %6459 = vmatpush3.bf16.msra.mxu1 %v7415_v40 }
 0x8e2   :  { %6460 = vmatprep.subr.bf16.mxu1 %v7418_v18 }
 0x8e5   :  { %6461 = vmatpush3.bf16.msra.mxu1 %v7416_v41 }
 0x8e6   :  { %6462 = vmatprep.subr.bf16.mxu1 %v7418_v18 }
 0x8e9   :  { %6463 = vmatpush3.bf16.msra.mxu1 %v7417_v42 }
 0x97f   :  { %v5081_v43 = vpop.f32.mrb[24].mxu1 }
 0x980   :  { %v5087_v44 = vmax.f32 %v5081_v43, 0.0  ;;  %v6426_v45 = vpop.f32.mrb[25].mxu1 }
 0x981   :  { %v5084_v46 = vpop.f32.mrb[26].mxu1 }
 0x982   :  { %v5088_v47 = vpack.c.bf16 %v5087_v44, %v5087_v44  ;;  %v6427_v48 = vpop.f32.mrb[27].mxu1 }
 0x984   :  { %6465 = vmatmul.mubr.bf16.vlgmr.msra.gmra.mrb[28].mxu1 %v5088_v47 }
 0xa57   :  { %v5293_v25 = vpop.f32.mrb[28].mxu1 }
 0xa58   :  { %v5299_v49 = vmax.f32 %v5293_v25, 0.0  ;;  %v6466_v31 = vpop.f32.mrb[29].mxu1 }
 0xa59   :  { %v5296_v50 = vpop.f32.mrb[30].mxu1 }
 0xa5a   :  { %5300 = vst [vmem:[%s9524_s4] sm:$0xff] %v5299_v49  ;;  %v6467_v18 = vpop.f32.mrb[31].mxu1 }

</bundles_post_ra>
